<compile_context>
chip_gen: v5e
topology: v5e:2x2
jax: 0.10.0
libtpu: 0.0.40
codegen_flags: <defaults>
</compile_context>

<pallas_src>
import jax
import jax.numpy as jnp
from jax.experimental import pallas as pl
from jax.experimental.pallas import tpu as pltpu

K_IN = 28 * 28          # 784 (kept unpadded; full-dim block)
HIDDEN = 256
N_OUT = 10
N_PAD = 128             # lane-dense output width


def _round_up(x, m):
    return (x + m - 1) // m * m


def _choose_tb(B):
    """Batch tile: lane/sublane friendly, >=2 steps for large B (v7x dual TC),
    capped at 1024, and not absurdly larger than a tiny batch."""
    tb = _round_up(pl.cdiv(B, 2), 256)   # at least 2 grid steps when B > 256
    tb = min(tb, 1024)                   # amortize ~0.35 us/step, big DMA bursts
    tb = min(tb, _round_up(B, 128))      # don't over-tile tiny batches
    return max(tb, 128)                  # clean (8/16, 128) vreg packing


def _mlp_kernel(x_ref, w1_ref, b1_ref, w2_ref, b2_ref, o_ref):
    # Cast activations to bf16 in-kernel (cheap VPU work hidden under DMA/MXU).
    x_bf = x_ref[...].astype(jnp.bfloat16)
    # fc1: bf16 MXU operands, f32 accumulate; f32 bias + ReLU epilogue.
    h = jnp.dot(x_bf, w1_ref[...], preferred_element_type=jnp.float32)
    h = jnp.maximum(h + b1_ref[...], 0.0)           # b1 [1,256] broadcasts
    # fc2: cast hidden back to bf16 for the MXU, accumulate f32.
    y = jnp.dot(h.astype(jnp.bfloat16), w2_ref[...],
                preferred_element_type=jnp.float32)
    o_ref[...] = y + b2_ref[...]                    # b2 [1,128] broadcasts


def neural_net_forward(x, w1, b1, w2, b2):
    """x: [B, 1, 28, 28] or [B, 784] float32.
    w1: [784, 256], b1: [1, 256], w2: [256, 10], b2: [1, 10] (all float32).
    Returns logits [B, 10] float32."""
    x2d = x.reshape(-1, K_IN).astype(jnp.float32)   # no pad, no bf16 copy
    B = x2d.shape[0]

    TB = _choose_tb(B)
    n_steps = pl.cdiv(B, TB)                        # ragged last block allowed

    # One-time weight prep (tiny): bf16 weights, f32 biases, N padded 10->128
    # with zero columns so padded logits are exactly zero.
    w1_bf = w1.astype(jnp.bfloat16)                               # (784, 256)
    b1_f = b1.astype(jnp.float32).reshape(1, HIDDEN)              # (1, 256)
    w2_p = jnp.zeros((HIDDEN, N_PAD), jnp.bfloat16)
    w2_p = w2_p.at[:, :N_OUT].set(w2.astype(jnp.bfloat16))        # (256, 128)
    b2_p = jnp.zeros((1, N_PAD), jnp.float32)
    b2_p = b2_p.at[:, :N_OUT].set(b2.astype(jnp.float32))         # (1, 128)

    flops = 2 * B * (K_IN * HIDDEN + HIDDEN * N_PAD)
    bytes_accessed = (
        B * K_IN * 4                      # x (f32, read once by the kernel)
        + K_IN * HIDDEN * 2               # w1 (bf16)
        + HIDDEN * N_PAD * 2              # w2 (bf16)
        + HIDDEN * 4 + N_PAD * 4          # biases (f32)
        + B * N_PAD * 4                   # output (f32)
    )

    out = pl.pallas_call(
        _mlp_kernel,
        out_shape=jax.ShapeDtypeStruct((B, N_PAD), jnp.float32),
        grid_spec=pltpu.PrefetchScalarGridSpec(
            num_scalar_prefetch=0,
            grid=(n_steps,),
            in_specs=[
                # x tile, full K (784 == full array dim -> (8,128) rule OK).
                pl.BlockSpec((TB, K_IN), lambda i: (i, 0)),
                # Resident operands (constant index_map -> no re-DMA per step).
                # TODO(synk): optionally pipeline_mode=pl.Buffered(1) on these
                # to drop the redundant second buffer (marginal VMEM saving).
                pl.BlockSpec((K_IN, HIDDEN), lambda i: (0, 0)),   # w1
                pl.BlockSpec((1, HIDDEN), lambda i: (0, 0)),      # b1
                pl.BlockSpec((HIDDEN, N_PAD), lambda i: (0, 0)),  # w2
                pl.BlockSpec((1, N_PAD), lambda i: (0, 0)),       # b2
            ],
            out_specs=pl.BlockSpec((TB, N_PAD), lambda i: (i, 0)),
        ),
        compiler_params=pltpu.CompilerParams(
            dimension_semantics=("parallel",),      # megacore sharding on v7x
            vmem_limit_bytes=32 * 1024 * 1024,      # TB=1024 fits on v5e too
        ),
        cost_estimate=pl.CostEstimate(
            flops=flops, transcendentals=0, bytes_accessed=bytes_accessed),
    )(x2d, w1_bf, b1_f, w2_p, b2_p)

    # Padded logit columns are exactly zero; slice back to the module's [B,10].
    # (In a real pipeline, feed the lane-dense (B, 128) slab downstream and
    # fuse the slice into the consumer to avoid this extra copy.)
    return out[:, :N_OUT]


def init_params(key):
    """Deterministic init matching nn.Linear defaults: U(-1/sqrt(fan_in), ...)."""
    k1, k2, k3, k4 = jax.random.split(key, 4)
    bound1 = 1.0 / jnp.sqrt(K_IN)
    bound2 = 1.0 / jnp.sqrt(HIDDEN)
    # stored as [in, out] (transpose of PyTorch's [out, in])
    w1 = jax.random.uniform(k1, (K_IN, HIDDEN), jnp.float32, -bound1, bound1)
    b1 = jax.random.uniform(k2, (1, HIDDEN), jnp.float32, -bound1, bound1)
    w2 = jax.random.uniform(k3, (HIDDEN, N_OUT), jnp.float32, -bound2, bound2)
    b2 = jax.random.uniform(k4, (1, N_OUT), jnp.float32, -bound2, bound2)
    return w1, b1, w2, b2


if __name__ == "__main__":
    key = jax.random.PRNGKey(0)
    kx, kp = jax.random.split(key)

    # Small MNIST-like batch: [B, C, H, W] = [8, 1, 28, 28]
    x = jax.random.normal(kx, (8, 1, 28, 28), jnp.float32)
    w1, b1, w2, b2 = init_params(kp)

    logits = neural_net_forward(x, w1, b1, w2, b2)
    logits = jax.block_until_ready(logits)

    # Reference in plain JAX (f32 math); bf16 MXU operands => looser tolerance.
    x2d = x.reshape(-1, K_IN)
    ref = jnp.maximum(x2d @ w1 + b1, 0.0) @ w2 + b2
    assert logits.shape == (8, N_OUT)
    assert jnp.allclose(logits, ref, atol=3e-2, rtol=3e-2), (
        jnp.max(jnp.abs(logits - ref)))

    print("KERNEL_OK")
</pallas_src>

<mosaic_0001>
module attributes {stable_mosaic.version = 11 : i64} {
  func.func @_mlp_kernel(%arg0: i32, %arg1: memref<128x784xf32, #tpu.memory_space<vmem>>, %arg2: memref<784x256xbf16, #tpu.memory_space<vmem>>, %arg3: memref<1x256xf32, #tpu.memory_space<vmem>>, %arg4: memref<256x128xbf16, #tpu.memory_space<vmem>>, %arg5: memref<1x128xf32, #tpu.memory_space<vmem>>, %arg6: memref<128x128xf32, #tpu.memory_space<vmem>>) attributes {dimension_semantics = [#tpu.dimension_semantics<parallel>], iteration_bounds = array<i64: 1>, scalar_prefetch = 0 : i64, scratch_operands = 0 : i64, tpu.core_type = #tpu.core_type<tc>, window_params = [{transform_indices = @transform_0, window_bounds = array<i64: 128, 784>}, {pipeline_mode = #tpu.pipeline_mode<synchronous>, transform_indices = @transform_1, window_bounds = array<i64: 784, 256>}, {pipeline_mode = #tpu.pipeline_mode<synchronous>, transform_indices = @transform_2, window_bounds = array<i64: 1, 256>}, {pipeline_mode = #tpu.pipeline_mode<synchronous>, transform_indices = @transform_3, window_bounds = array<i64: 256, 128>}, {pipeline_mode = #tpu.pipeline_mode<synchronous>, transform_indices = @transform_4, window_bounds = array<i64: 1, 128>}, {transform_indices = @transform_5, window_bounds = array<i64: 128, 128>}]} {
    %c0 = arith.constant 0 : index
    %c0_0 = arith.constant 0 : index
    %0 = vector.load %arg1[%c0, %c0_0] : memref<128x784xf32, #tpu.memory_space<vmem>>, vector<128x784xf32>
    %1 = arith.truncf %0 : vector<128x784xf32> to vector<128x784xbf16>
    %c0_1 = arith.constant 0 : index
    %c0_2 = arith.constant 0 : index
    %2 = vector.load %arg2[%c0_1, %c0_2] : memref<784x256xbf16, #tpu.memory_space<vmem>>, vector<784x256xbf16>
    %cst = arith.constant dense<0.000000e+00> : vector<128x256xf32>
    %3 = tpu.matmul %1, %2, %cst {dimension_numbers = #tpu.dot_dimension_numbers<[1], [0], [0], [1], [0, 0, 1, 1], [], []>} : vector<128x784xbf16>, vector<784x256xbf16>, vector<128x256xf32> -> vector<128x256xf32>
    %c0_3 = arith.constant 0 : index
    %c0_4 = arith.constant 0 : index
    %4 = vector.load %arg3[%c0_3, %c0_4] : memref<1x256xf32, #tpu.memory_space<vmem>>, vector<1x256xf32>
    %5 = vector.broadcast %4 : vector<1x256xf32> to vector<128x256xf32>
    %6 = arith.addf %3, %5 : vector<128x256xf32>
    %cst_5 = arith.constant 0.000000e+00 : f32
    %7 = vector.broadcast %cst_5 : f32 to vector<128x256xf32>
    %8 = arith.maximumf %6, %7 : vector<128x256xf32>
    %9 = arith.truncf %8 : vector<128x256xf32> to vector<128x256xbf16>
    %c0_6 = arith.constant 0 : index
    %c0_7 = arith.constant 0 : index
    %10 = vector.load %arg4[%c0_6, %c0_7] : memref<256x128xbf16, #tpu.memory_space<vmem>>, vector<256x128xbf16>
    %cst_8 = arith.constant dense<0.000000e+00> : vector<128x128xf32>
    %11 = tpu.matmul %9, %10, %cst_8 {dimension_numbers = #tpu.dot_dimension_numbers<[1], [0], [0], [1], [0, 0, 1, 1], [], []>} : vector<128x256xbf16>, vector<256x128xbf16>, vector<128x128xf32> -> vector<128x128xf32>
    %c0_9 = arith.constant 0 : index
    %c0_10 = arith.constant 0 : index
    %12 = vector.load %arg5[%c0_9, %c0_10] : memref<1x128xf32, #tpu.memory_space<vmem>>, vector<1x128xf32>
    %13 = vector.broadcast %12 : vector<1x128xf32> to vector<128x128xf32>
    %14 = arith.addf %11, %13 : vector<128x128xf32>
    %c0_11 = arith.constant 0 : index
    %c0_12 = arith.constant 0 : index
    %15 = vector.load %arg6[%c0_11, %c0_12] : memref<128x128xf32, #tpu.memory_space<vmem>>, vector<128x128xf32>
    tpu.vector_store %arg6[%c0_11, %c0_12], %14 {strides = array<i32>} : memref<128x128xf32, #tpu.memory_space<vmem>>, vector<128x128xf32>,
    return
  }
  func.func @transform_0(%arg0: i32) -> (i32, i32) {
    %c0_i32 = arith.constant 0 : i32
    %c0_i32_0 = arith.constant 0 : i32
    return %arg0, %c0_i32 : i32, i32
  }
  func.func @transform_1(%arg0: i32) -> (i32, i32) {
    %c0_i32 = arith.constant 0 : i32
    %c0_i32_0 = arith.constant 0 : i32
    %c0_i32_1 = arith.constant 0 : i32
    return %c0_i32, %c0_i32_0 : i32, i32
  }
  func.func @transform_2(%arg0: i32) -> (i32, i32) {
    %c0_i32 = arith.constant 0 : i32
    %c0_i32_0 = arith.constant 0 : i32
    %c0_i32_1 = arith.constant 0 : i32
    return %c0_i32, %c0_i32_0 : i32, i32
  }
  func.func @transform_3(%arg0: i32) -> (i32, i32) {
    %c0_i32 = arith.constant 0 : i32
    %c0_i32_0 = arith.constant 0 : i32
    %c0_i32_1 = arith.constant 0 : i32
    return %c0_i32, %c0_i32_0 : i32, i32
  }
  func.func @transform_4(%arg0: i32) -> (i32, i32) {
    %c0_i32 = arith.constant 0 : i32
    %c0_i32_0 = arith.constant 0 : i32
    %c0_i32_1 = arith.constant 0 : i32
    return %c0_i32, %c0_i32_0 : i32, i32
  }
  func.func @transform_5(%arg0: i32) -> (i32, i32) {
    %c0_i32 = arith.constant 0 : i32
    %c0_i32_0 = arith.constant 0 : i32
    return %arg0, %c0_i32 : i32, i32
  }
}

</mosaic_0001>

<bundles_post_ra>
// kernel: tpu_custom_call.1
= control target key start
LH: loop header
LB: loop body
LE: loop exit
PB: predicated region body
PF: predicated region fallthrough
CT: control target
= control target key end

     0   :  { %10 = vsyncpa [#allocation3], 0  ;;  %s3101_s0 = inlined_call_operand.hbm [shape: f32[8,784], index: 0, kind: input, shape index: {}]   ;;  %s3102_s1 = inlined_call_operand.hbm [shape: bf16[784,256], index: 1, kind: input, shape index: {}]   ;;  %s3103_s2 = inlined_call_operand.hbm [shape: f32[1,256], index: 2, kind: input, shape index: {}]   ;;  %s3104_s3 = inlined_call_operand.hbm [shape: bf16[256,128], index: 3, kind: input, shape index: {}]   ;;  %s3105_s4 = inlined_call_operand.vmem [shape: f32[1,128], index: 4, kind: input, shape index: {}]   ;;  %s3106_s5 = inlined_call_operand.hbm [shape: f32[8,128], index: 5, kind: output, shape index: {}]  }
   0x1   :  { %11 = vsyncpa [#allocation6], 0 }
   0x2   :  { %12 = vsyncpa [#allocation9], 0 }
   0x3   :  { %13 = vsyncpa [#allocation4], 0  ;;  %s31_s20 = sshll.u32 %s3102_s1, 4  ;;  %s32_s20 = int_to_ptr.hbm [resolvable:$true] %s31_s20 }
   0x4   :  { %17 = vsyncadd [#allocation3], 13440  ;;  %s2598_s21 = smov [#allocation5]   ;;  %s18_s25 = sshll.u32 %s3101_s0, 4  ;;  %s19_s25 = int_to_ptr.hbm [resolvable:$true] %s18_s25 }
   0x5   :  { %s33_s22 = sshll.u32 %s2598_s21, 4  ;;  %s2599_s26 = smov 128   ;;  %s34_s22 = int_to_ptr.vmem [resolvable:$true] %s33_s22 }
   0x6   :  { %s2600_s27 = smov 8   ;;  %s2601_s28 = smov [#allocation2]  }
   0x7   :  { %39 = dma.hbm_to_vmem [thread:$0]  %s32_s20, 12544, %s34_s22, [#allocation6], %s2599_s26, %s2599_s26, %s2600_s27  }
   0x8   :  { %s20_s29 = sshll.u32 %s2601_s28, 4  ;;  %s2602_s1 = smov 896   ;;  %s21_s29 = int_to_ptr.vmem [resolvable:$true] %s20_s29 }
   0x9   :  { %s2603_s30 = smov 56   ;;  %s45_s8 = sshll.u32 %s3103_s2, 4  ;;  %s46_s8 = int_to_ptr.hbm [resolvable:$true] %s45_s8 }
   0xa   :  { %26 = dma.hbm_to_vmem [thread:$0]  %s19_s25, 896, %s21_s29, [#allocation3], %s2602_s1, %s2602_s1, %s2603_s30  }
   0xb   :  { %s2604_s9 = smov [#allocation7]   ;;  %s55_s12 = sshll.u32 %s3104_s3, 4  ;;  %s56_s12 = int_to_ptr.hbm [resolvable:$true] %s55_s12 }
   0xc   :  { %s47_s0 = sshll.u32 %s2604_s9, 4  ;;  %s2605_s13 = smov [#allocation8]   ;;  %s48_s0 = int_to_ptr.vmem [resolvable:$true] %s47_s0 }
   0xd   :  { %50 = dma.hbm_to_vmem [thread:$0]  %s46_s8, 32, %s48_s0, [#allocation6]  }
   0xe   :  { %s57_s14 = sshll.u32 %s2605_s13, 4  ;;  %s2606_s15 = smov 64   ;;  %s58_s14 = int_to_ptr.vmem [resolvable:$true] %s57_s14 }
   0xf   :  { %s2607_s16 = smov 4  }
  0x10   :  { %63 = dma.hbm_to_vmem [thread:$0]  %s56_s12, 2048, %s58_s14, [#allocation9], %s2606_s15, %s2606_s15, %s2607_s16  }
  0x11   :  { %2590 = dma.done.wait [#allocation3], 14336  }
  0x12   :  { %2591 = vsyncadd [#allocation3], 4294952960 }
  0x13   :  { %2592 = dma.done.wait [#allocation6], 12576  }
  0x14   :  { %2593 = vsyncadd [#allocation6], 4294954720 }
  0x15   :  { %2594 = dma.done.wait [#allocation9], 2048  }
  0x16   :  { %2595 = vsyncadd [#allocation9], 4294965248  ;;  %v1929_v0 = vld [vmem:[#allocation5 + $0x70] sm:$0xf]  ;;  %v2358_v1 = vld [vmem:[#allocation5 + $0x74] sm:$0xf0] }
  0x17   :  { %v1993_v2 = vld [vmem:[#allocation5 + $0xf0] sm:$0xf]  ;;  %v1930_v3 = vor.u32 %v2358_v1, %v1929_v0  ;;  %v2374_v4 = vld [vmem:[#allocation5 + $0xf4] sm:$0xf0]  ;;  %v1921_v11 = vld [vmem:[#allocation5 + $0x60] sm:$0xf] }
  0x18   :  { %v2057_v5 = vld [vmem:[#allocation5 + $0x170] sm:$0xf]  ;;  %v2390_v6 = vld [vmem:[#allocation5 + $0x174] sm:$0xf0]  ;;  %v1994_v7 = vor.u32 %v2374_v4, %v1993_v2  ;;  %v2356_v13 = vld [vmem:[#allocation5 + $0x64] sm:$0xf0] }
  0x19   :  { %v2058_v8 = vor.u32 %v2390_v6, %v2057_v5  ;;  %v2121_v9 = vld [vmem:[#allocation5 + $0x1f0] sm:$0xf]  ;;  %v2406_v10 = vld [vmem:[#allocation5 + $0x1f4] sm:$0xf0]  ;;  %870 = vmatpush.bf16.msra.mxu0 %v1930_v3  ;;  %v1985_v14 = vld [vmem:[#allocation5 + $0xe0] sm:$0xf]  ;;  %v1922_v16 = vor.u32 %v2356_v13, %v1921_v11 }
  0x1a   :  { %v2122_v12 = vor.u32 %v2406_v10, %v2121_v9  ;;  %v2372_v15 = vld [vmem:[#allocation5 + $0xe4] sm:$0xf0]  ;;  %919 = vmatpush.bf16.msra.mxu1 %v1994_v7  ;;  %v2049_v18 = vld [vmem:[#allocation5 + $0x160] sm:$0xf]  ;;  %v1913_v23 = vld [vmem:[#allocation5 + $0x50] sm:$0xf] }
  0x1b   :  { %968 = vmatpush.bf16.msra.mxu2 %v2058_v8  ;;  %v1986_v17 = vor.u32 %v2372_v15, %v1985_v14  ;;  %v2388_v19 = vld [vmem:[#allocation5 + $0x164] sm:$0xf0]  ;;  %v2113_v20 = vld [vmem:[#allocation5 + $0x1e0] sm:$0xf]  ;;  %v2354_v24 = vld [vmem:[#allocation5 + $0x54] sm:$0xf0] }
  0x1c   :  { %1017 = vmatpush.bf16.msra.mxu3 %v2122_v12  ;;  %v2050_v21 = vor.u32 %v2388_v19, %v2049_v18  ;;  %v2404_v22 = vld [vmem:[#allocation5 + $0x1e4] sm:$0xf0]  ;;  %v1977_v26 = vld [vmem:[#allocation5 + $0xd0] sm:$0xf]  ;;  %v2370_v27 = vld [vmem:[#allocation5 + $0xd4] sm:$0xf0]  ;;  %v1914_v29 = vor.u32 %v2354_v24, %v1913_v23 }
  0x1d   :  { %v2114_v25 = vor.u32 %v2404_v22, %v2113_v20  ;;  %v2041_v28 = vld [vmem:[#allocation5 + $0x150] sm:$0xf]  ;;  %871 = vmatpush.bf16.msra.mxu0 %v1922_v16  ;;  %v2386_v30 = vld [vmem:[#allocation5 + $0x154] sm:$0xf0]  ;;  %v1978_v33 = vor.u32 %v2370_v27, %v1977_v26  ;;  %v1905_v35 = vld [vmem:[#allocation5 + $0x40] sm:$0xf] }
  0x1e   :  { %v2105_v31 = vld [vmem:[#allocation5 + $0x1d0] sm:$0xf]  ;;  %v2402_v32 = vld [vmem:[#allocation5 + $0x1d4] sm:$0xf0]  ;;  %920 = vmatpush.bf16.msra.mxu1 %v1986_v17  ;;  %v2042_v34 = vor.u32 %v2386_v30, %v2041_v28  ;;  %v2352_v36 = vld [vmem:[#allocation5 + $0x44] sm:$0xf0] }
  0x1f   :  { %969 = vmatpush.bf16.msra.mxu2 %v2050_v21  ;;  %v1969_v37 = vld [vmem:[#allocation5 + $0xc0] sm:$0xf]  ;;  %v2106_v38 = vor.u32 %v2402_v32, %v2105_v31  ;;  %v2368_v39 = vld [vmem:[#allocation5 + $0xc4] sm:$0xf0]  ;;  %v1906_v44 = vor.u32 %v2352_v36, %v1905_v35  ;;  %v1897_v47 = vld [vmem:[#allocation5 + $0x30] sm:$0xf] }
  0x20   :  { %1018 = vmatpush.bf16.msra.mxu3 %v2114_v25  ;;  %v2033_v40 = vld [vmem:[#allocation5 + $0x140] sm:$0xf]  ;;  %v2384_v41 = vld [vmem:[#allocation5 + $0x144] sm:$0xf0]  ;;  %v1970_v45 = vor.u32 %v2368_v39, %v1969_v37  ;;  %v2350_v48 = vld [vmem:[#allocation5 + $0x34] sm:$0xf0] }
  0x21   :  { %v2097_v42 = vld [vmem:[#allocation5 + $0x1c0] sm:$0xf]  ;;  %v2400_v43 = vld [vmem:[#allocation5 + $0x1c4] sm:$0xf0]  ;;  %872 = vmatpush.bf16.msra.mxu0 %v1914_v29  ;;  %v2034_v46 = vor.u32 %v2384_v41, %v2033_v40  ;;  %v1961_v49 = vld [vmem:[#allocation5 + $0xb0] sm:$0xf]  ;;  %v1898_v56 = vor.u32 %v2350_v48, %v1897_v47 }
  0x22   :  { %921 = vmatpush.bf16.msra.mxu1 %v1978_v33  ;;  %v2098_v50 = vor.u32 %v2400_v43, %v2097_v42  ;;  %v2366_v51 = vld [vmem:[#allocation5 + $0xb4] sm:$0xf0]  ;;  %v2025_v52 = vld [vmem:[#allocation5 + $0x130] sm:$0xf]  ;;  %v1889_v59 = vld [vmem:[#allocation5 + $0x20] sm:$0xf] }
  0x23   :  { %970 = vmatpush.bf16.msra.mxu2 %v2042_v34  ;;  %v2382_v53 = vld [vmem:[#allocation5 + $0x134] sm:$0xf0]  ;;  %v2089_v54 = vld [vmem:[#allocation5 + $0x1b0] sm:$0xf]  ;;  %v1962_v57 = vor.u32 %v2366_v51, %v1961_v49  ;;  %v2348_v60 = vld [vmem:[#allocation5 + $0x24] sm:$0xf0] }
  0x24   :  { %1019 = vmatpush.bf16.msra.mxu3 %v2106_v38  ;;  %v2398_v55 = vld [vmem:[#allocation5 + $0x1b4] sm:$0xf0]  ;;  %v2026_v58 = vor.u32 %v2382_v53, %v2025_v52  ;;  %v1953_v61 = vld [vmem:[#allocation5 + $0xa0] sm:$0xf]  ;;  %v2364_v63 = vld [vmem:[#allocation5 + $0xa4] sm:$0xf0]  ;;  %v1890_v4 = vor.u32 %v2348_v60, %v1889_v59 }
  0x25   :  { %873 = vmatpush.bf16.msra.mxu0 %v1906_v44  ;;  %v2090_v62 = vor.u32 %v2398_v55, %v2089_v54  ;;  %v2017_v0 = vld [vmem:[#allocation5 + $0x120] sm:$0xf]  ;;  %v2380_v1 = vld [vmem:[#allocation5 + $0x124] sm:$0xf0]  ;;  %v1954_v5 = vor.u32 %v2364_v63, %v1953_v61  ;;  %v1881_v7 = vld [vmem:[#allocation5 + $0x10] sm:$0xf] }
  0x26   :  { %922 = vmatpush.bf16.msra.mxu1 %v1970_v45  ;;  %v2081_v2 = vld [vmem:[#allocation5 + $0x1a0] sm:$0xf]  ;;  %v2396_v3 = vld [vmem:[#allocation5 + $0x1a4] sm:$0xf0]  ;;  %v2018_v6 = vor.u32 %v2380_v1, %v2017_v0  ;;  %v2346_v8 = vld [vmem:[#allocation5 + $0x14] sm:$0xf0] }
  0x27   :  { %971 = vmatpush.bf16.msra.mxu2 %v2034_v46  ;;  %v1945_v9 = vld [vmem:[#allocation5 + $0x90] sm:$0xf]  ;;  %v2082_v10 = vor.u32 %v2396_v3, %v2081_v2  ;;  %v2362_v11 = vld [vmem:[#allocation5 + $0x94] sm:$0xf0]  ;;  %v1882_v16 = vor.u32 %v2346_v8, %v1881_v7  ;;  %v1873_v17 = vld [vmem:[#allocation5] sm:$0xf] }
  0x28   :  { %1020 = vmatpush.bf16.msra.mxu3 %v2098_v50  ;;  %v2009_v12 = vld [vmem:[#allocation5 + $0x110] sm:$0xf]  ;;  %v2378_v13 = vld [vmem:[#allocation5 + $0x114] sm:$0xf0]  ;;  %v2344_v18 = vld [vmem:[#allocation5 + $0x4] sm:$0xf0]  ;;  %v1946_v20 = vor.u32 %v2362_v11, %v1945_v9 }
  0x29   :  { %874 = vmatpush.bf16.msra.mxu0 %v1898_v56  ;;  %v2073_v14 = vld [vmem:[#allocation5 + $0x190] sm:$0xf]  ;;  %v2394_v15 = vld [vmem:[#allocation5 + $0x194] sm:$0xf0]  ;;  %v1937_v19 = vld [vmem:[#allocation5 + $0x80] sm:$0xf]  ;;  %v2010_v21 = vor.u32 %v2378_v13, %v2009_v12  ;;  %v1874_v32 = vor.u32 %v2344_v18, %v1873_v17 }
  0x2a   :  { %923 = vmatpush.bf16.msra.mxu1 %v1962_v57  ;;  %v2360_v22 = vld [vmem:[#allocation5 + $0x84] sm:$0xf0]  ;;  %v2001_v23 = vld [vmem:[#allocation5 + $0x100] sm:$0xf]  ;;  %v2074_v25 = vor.u32 %v2394_v15, %v2073_v14  ;;  %v90_v29 = vld [vmem:[#allocation2 + $0x38] sm:$0xff]  ;;  %vm845_vm0 = vcmask 130048  }
  0x2b   :  { %972 = vmatpush.bf16.msra.mxu2 %v2026_v58  ;;  %v2376_v24 = vld [vmem:[#allocation5 + $0x104] sm:$0xf0]  ;;  %v2065_v26 = vld [vmem:[#allocation5 + $0x180] sm:$0xf]  ;;  %v2185_v30 = vld [vmem:[#allocation5 + $0x270] sm:$0xf]  ;;  %v1938_v36 = vor.u32 %v2360_v22, %v1937_v19 }
  0x2c   :  { %1021 = vmatpush.bf16.msra.mxu3 %v2090_v62  ;;  %v2392_v27 = vld [vmem:[#allocation5 + $0x184] sm:$0xf0]  ;;  %v83_v28 = vld [vmem:[#allocation2] sm:$0xff]  ;;  %v2422_v31 = vld [vmem:[#allocation5 + $0x274] sm:$0xf0]  ;;  %v2002_v37 = vor.u32 %v2376_v24, %v2001_v23 }
  0x2d   :  { %875 = vmatpush.bf16.msra.mxu0 %v1890_v4  ;;  %v84_v33 = vld [vmem:[#allocation2 + $0x8] sm:$0xff]  ;;  %v2249_v34 = vld [vmem:[#allocation5 + $0x2f0] sm:$0xf]  ;;  %v2438_v35 = vld [vmem:[#allocation5 + $0x2f4] sm:$0xf0]  ;;  %v2066_v41 = vor.u32 %v2392_v27, %v2065_v26  ;;  %v2186_v42 = vor.u32 %v2422_v31, %v2185_v30  ;;  %v2654_v45 = vpack.c.bf16 %v90_v29, %v83_v28 }
  0x2e   :  { %924 = vmatpush.bf16.msra.mxu1 %v1954_v5  ;;  %v91_v38 = vld [vmem:[#allocation2 + $0x40] sm:$0xff]  ;;  %v85_v39 = vld [vmem:[#allocation2 + $0x10] sm:$0xff]  ;;  %v92_v40 = vld [vmem:[#allocation2 + $0x48] sm:$0xff]  ;;  %v2250_v46 = vor.u32 %v2438_v35, %v2249_v34 }
  0x2f   :  { %973 = vmatpush.bf16.msra.mxu2 %v2018_v6  ;;  %v86_v43 = vld [vmem:[#allocation2 + $0x18] sm:$0xff]  ;;  %v93_v44 = vld [vmem:[#allocation2 + $0x50] sm:$0xff]  ;;  %v2177_v47 = vld [vmem:[#allocation5 + $0x260] sm:$0xf]  ;;  %v2656_v49 = vpack.c.bf16 %v91_v38, %v84_v33  ;;  %v2658_v50 = vpack.c.bf16 %v92_v40, %v85_v39 }
  0x30   :  { %1022 = vmatpush.bf16.msra.mxu3 %v2082_v10  ;;  %v2420_v48 = vld [vmem:[#allocation5 + $0x264] sm:$0xf0]  ;;  %v2241_v51 = vld [vmem:[#allocation5 + $0x2e0] sm:$0xf]  ;;  %v2660_v53 = vpack.c.bf16 %v93_v44, %v86_v43  ;;  %v2169_v56 = vld [vmem:[#allocation5 + $0x250] sm:$0xf] }
  0x31   :  { %876 = vmatpush.bf16.msra.mxu0 %v1882_v16  ;;  %v2436_v52 = vld [vmem:[#allocation5 + $0x2e4] sm:$0xf0]  ;;  %v2178_v54 = vor.u32 %v2420_v48, %v2177_v47  ;;  %v2418_v57 = vld [vmem:[#allocation5 + $0x254] sm:$0xf0]  ;;  %v2233_v58 = vld [vmem:[#allocation5 + $0x2d0] sm:$0xf] }
  0x32   :  { %925 = vmatpush.bf16.msra.mxu1 %v1946_v20  ;;  %v2242_v55 = vor.u32 %v2436_v52, %v2241_v51  ;;  %v2434_v59 = vld [vmem:[#allocation5 + $0x2d4] sm:$0xf0]  ;;  %v2170_v60 = vor.u32 %v2418_v57, %v2169_v56  ;;  %v97_v62 = vld [vmem:[#allocation2 + $0x70] sm:$0xff]  ;;  %v104_v63 = vld [vmem:[#allocation2 + $0xa8] sm:$0xff] }
  0x33   :  { %974 = vmatpush.bf16.msra.mxu2 %v2010_v21  ;;  %v2234_v61 = vor.u32 %v2434_v59, %v2233_v58  ;;  %v98_v0 = vld [vmem:[#allocation2 + $0x78] sm:$0xff]  ;;  %v105_v1 = vld [vmem:[#allocation2 + $0xb0] sm:$0xff]  ;;  %v99_v2 = vld [vmem:[#allocation2 + $0x80] sm:$0xff]  ;;  %v2666_v6 = vpack.c.bf16 %v104_v63, %v97_v62 }
  0x34   :  { %1023 = vmatpush.bf16.msra.mxu3 %v2074_v25  ;;  %v106_v3 = vld [vmem:[#allocation2 + $0xb8] sm:$0xff]  ;;  %v100_v4 = vld [vmem:[#allocation2 + $0x88] sm:$0xff]  ;;  %v107_v5 = vld [vmem:[#allocation2 + $0xc0] sm:$0xff]  ;;  %v2668_v7 = vpack.c.bf16 %v105_v1, %v98_v0 }
  0x35   :  { %877 = vmatpush.bf16.msra.mxu0 %v1874_v32  ;;  %v2670_v8 = vpack.c.bf16 %v106_v3, %v99_v2  ;;  %v2672_v9 = vpack.c.bf16 %v107_v5, %v100_v4  ;;  %v2161_v10 = vld [vmem:[#allocation5 + $0x240] sm:$0xf]  ;;  %v2416_v11 = vld [vmem:[#allocation5 + $0x244] sm:$0xf0]  ;;  %v118_v17 = vld [vmem:[#allocation2 + $0x118] sm:$0xff] }
  0x36   :  { %926 = vmatpush.bf16.msra.mxu1 %v1938_v36  ;;  %v2162_v12 = vor.u32 %v2416_v11, %v2161_v10  ;;  %v2225_v13 = vld [vmem:[#allocation5 + $0x2c0] sm:$0xf]  ;;  %v2432_v14 = vld [vmem:[#allocation5 + $0x2c4] sm:$0xf0]  ;;  %v113_v20 = vld [vmem:[#allocation2 + $0xf0] sm:$0xff] }
  0x37   :  { %975 = vmatpush.bf16.msra.mxu2 %v2002_v37  ;;  %v2226_v15 = vor.u32 %v2432_v14, %v2225_v13  ;;  %v111_v16 = vld [vmem:[#allocation2 + $0xe0] sm:$0xff]  ;;  %v112_v18 = vld [vmem:[#allocation2 + $0xe8] sm:$0xff]  ;;  %v114_v22 = vld [vmem:[#allocation2 + $0xf8] sm:$0xff] }
  0x38   :  { %1024 = vmatpush.bf16.msra.mxu3 %v2066_v41  ;;  %878 = vmatmul.bf16.vlgmr.msra.gmra.mxu0 %v2654_v45  ;;  %v119_v19 = vld [vmem:[#allocation2 + $0x120] sm:$0xff]  ;;  %v120_v21 = vld [vmem:[#allocation2 + $0x128] sm:$0xff]  ;;  %v121_v23 = vld [vmem:[#allocation2 + $0x130] sm:$0xff]  ;;  %v2678_v24 = vpack.c.bf16 %v118_v17, %v111_v16 }
  0x39   :  { %1066 = vmatpush.bf16.msrb.mxu0 %v2186_v42  ;;  %927 = vmatmul.bf16.vlgmr.msra.gmra.mxu1 %v2656_v49  ;;  %v2680_v25 = vpack.c.bf16 %v119_v19, %v112_v18  ;;  %v2682_v26 = vpack.c.bf16 %v120_v21, %v113_v20  ;;  %v2684_v27 = vpack.c.bf16 %v121_v23, %v114_v22  ;;  %v2153_v28 = vld [vmem:[#allocation5 + $0x230] sm:$0xf]  ;;  %v2414_v29 = vld [vmem:[#allocation5 + $0x234] sm:$0xf0]  ;;  %v132_v35 = vld [vmem:[#allocation2 + $0x188] sm:$0xff] }
  0x3a   :  { %1115 = vmatpush.bf16.msrb.mxu1 %v2250_v46  ;;  %976 = vmatmul.bf16.vlgmr.msra.gmra.mxu2 %v2658_v50  ;;  %v2154_v30 = vor.u32 %v2414_v29, %v2153_v28  ;;  %v2217_v31 = vld [vmem:[#allocation5 + $0x2b0] sm:$0xf]  ;;  %v2430_v32 = vld [vmem:[#allocation5 + $0x2b4] sm:$0xf0]  ;;  %v127_v38 = vld [vmem:[#allocation2 + $0x160] sm:$0xff] }
  0x3b   :  { %1025 = vmatmul.bf16.vlgmr.msra.gmra.mxu3 %v2660_v53  ;;  %v2218_v33 = vor.u32 %v2430_v32, %v2217_v31  ;;  %v125_v34 = vld [vmem:[#allocation2 + $0x150] sm:$0xff]  ;;  %v126_v36 = vld [vmem:[#allocation2 + $0x158] sm:$0xff]  ;;  %v128_v40 = vld [vmem:[#allocation2 + $0x168] sm:$0xff] }
  0x3c   :  { %v133_v37 = vld [vmem:[#allocation2 + $0x190] sm:$0xff]  ;;  %v134_v39 = vld [vmem:[#allocation2 + $0x198] sm:$0xff]  ;;  %v135_v41 = vld [vmem:[#allocation2 + $0x1a0] sm:$0xff]  ;;  %v2690_v42 = vpack.c.bf16 %v132_v35, %v125_v34 }
  0x3d   :  { %1067 = vmatpush.bf16.msrb.mxu0 %v2178_v54  ;;  %v2692_v43 = vpack.c.bf16 %v133_v37, %v126_v36  ;;  %v2694_v44 = vpack.c.bf16 %v134_v39, %v127_v38  ;;  %v2696_v46 = vpack.c.bf16 %v135_v41, %v128_v40  ;;  %v2145_v47 = vld [vmem:[#allocation5 + $0x220] sm:$0xf]  ;;  %v2412_v48 = vld [vmem:[#allocation5 + $0x224] sm:$0xf0]  ;;  %v146_v57 = vld [vmem:[#allocation2 + $0x1f8] sm:$0xff] }
  0x3e   :  { %1116 = vmatpush.bf16.msrb.mxu1 %v2242_v55  ;;  %v2146_v51 = vor.u32 %v2412_v48, %v2145_v47  ;;  %v2209_v52 = vld [vmem:[#allocation5 + $0x2a0] sm:$0xf]  ;;  %v2428_v54 = vld [vmem:[#allocation5 + $0x2a4] sm:$0xf0]  ;;  %v142_v62 = vld [vmem:[#allocation2 + $0x1d8] sm:$0xff] }
  0x3f   :  { %v2210_v55 = vor.u32 %v2428_v54, %v2209_v52  ;;  %v139_v56 = vld [vmem:[#allocation2 + $0x1c0] sm:$0xff]  ;;  %v140_v58 = vld [vmem:[#allocation2 + $0x1c8] sm:$0xff]  ;;  %v149_v63 = vld [vmem:[#allocation2 + $0x210] sm:$0xff] }
  0x40   :  { %v147_v59 = vld [vmem:[#allocation2 + $0x200] sm:$0xff]  ;;  %v2702_v0 = vpack.c.bf16 %v146_v57, %v139_v56  ;;  %v2708_v3 = vpack.c.bf16 %v149_v63, %v142_v62  ;;  %v2137_v4 = vld [vmem:[#allocation5 + $0x210] sm:$0xf]  ;;  %v2410_v5 = vld [vmem:[#allocation5 + $0x214] sm:$0xf0] }
  0x41   :  { %1068 = vmatpush.bf16.msrb.mxu0 %v2170_v60  ;;  %v141_v60 = vld [vmem:[#allocation2 + $0x1d0] sm:$0xff]  ;;  %v2704_v1 = vpack.c.bf16 %v147_v59, %v140_v58  ;;  %v2138_v11 = vor.u32 %v2410_v5, %v2137_v4  ;;  %v2426_v13 = vld [vmem:[#allocation5 + $0x294] sm:$0xf0]  ;;  %v1931_v14 = vld [vmem:[#allocation5 + $0x78] sm:$0xf0] }
  0x42   :  { %1117 = vmatpush.bf16.msrb.mxu1 %v2234_v61  ;;  %v148_v61 = vld [vmem:[#allocation2 + $0x208] sm:$0xff]  ;;  %v2357_v10 = vld [vmem:[#allocation5 + $0x74] sm:$0xf]  ;;  %v2355_v17 = vld [vmem:[#allocation5 + $0x64] sm:$0xf] }
  0x43   :  { %v2706_v2 = vpack.c.bf16 %v148_v61, %v141_v60  ;;  %v1934_v16 = vor.u32 %v2357_v10, %v1931_v14  ;;  %v1923_v18 = vld [vmem:[#allocation5 + $0x68] sm:$0xf0]  ;;  %v2353_v20 = vld [vmem:[#allocation5 + $0x54] sm:$0xf]  ;;  %v1915_v21 = vld [vmem:[#allocation5 + $0x58] sm:$0xf0] }
  0x44   :  { %v1926_v19 = vor.u32 %v2355_v17, %v1923_v18  ;;  %v153_v22 = vld [vmem:[#allocation2 + $0x230] sm:$0xff]  ;;  %v160_v23 = vld [vmem:[#allocation2 + $0x268] sm:$0xff]  ;;  %v154_v28 = vld [vmem:[#allocation2 + $0x238] sm:$0xff]  ;;  %v1918_v29 = vor.u32 %v2353_v20, %v1915_v21 }
  0x45   :  { %1069 = vmatpush.bf16.msrb.mxu0 %v2162_v12  ;;  %v2201_v12 = vld [vmem:[#allocation5 + $0x290] sm:$0xf]  ;;  %1213 = vmatpush.bf16.msrb.mxu3 %v1934_v16  ;;  %v155_v31 = vld [vmem:[#allocation2 + $0x240] sm:$0xff]  ;;  %v162_v32 = vld [vmem:[#allocation2 + $0x278] sm:$0xff]  ;;  %v2714_v35 = vpack.c.bf16 %v160_v23, %v153_v22 }
  0x46   :  { %1118 = vmatpush.bf16.msrb.mxu1 %v2226_v15  ;;  %v2202_v15 = vor.u32 %v2426_v13, %v2201_v12  ;;  %v163_v34 = vld [vmem:[#allocation2 + $0x280] sm:$0xff]  ;;  %v1907_v37 = vld [vmem:[#allocation5 + $0x48] sm:$0xf0]  ;;  %v2718_v39 = vpack.c.bf16 %v162_v32, %v155_v31  ;;  %v2408_v48 = vld [vmem:[#allocation5 + $0x204] sm:$0xf0] }
  0x47   :  { %v2351_v36 = vld [vmem:[#allocation5 + $0x44] sm:$0xf]  ;;  %v2129_v47 = vld [vmem:[#allocation5 + $0x200] sm:$0xf]  ;;  %v1899_v56 = vld [vmem:[#allocation5 + $0x38] sm:$0xf0] }
  0x48   :  { %883 = vmatmul.bf16.gmra.mxu0 %v2666_v6  ;;  %v1910_v41 = vor.u32 %v2351_v36, %v1907_v37  ;;  %v2130_v52 = vor.u32 %v2408_v48, %v2129_v47  ;;  %v2193_v54 = vld [vmem:[#allocation5 + $0x280] sm:$0xf]  ;;  %v2440_v60 = vld [vmem:[#allocation5 + $0x304] sm:$0xf0]  ;;  %v2347_v62 = vld [vmem:[#allocation5 + $0x24] sm:$0xf] }
  0x49   :  { %932 = vmatmul.bf16.gmra.mxu1 %v2668_v7  ;;  %1070 = vmatpush.bf16.msrb.mxu0 %v2154_v30  ;;  %v161_v30 = vld [vmem:[#allocation2 + $0x270] sm:$0xff]  ;;  %v2257_v59 = vld [vmem:[#allocation5 + $0x300] sm:$0xf]  ;;  %v1891_v63 = vld [vmem:[#allocation5 + $0x28] sm:$0xf0] }
  0x4a   :  { %981 = vmatmul.bf16.gmra.mxu2 %v2670_v8  ;;  %1119 = vmatpush.bf16.msrb.mxu1 %v2218_v33  ;;  %v156_v33 = vld [vmem:[#allocation2 + $0x248] sm:$0xff]  ;;  %v2716_v38 = vpack.c.bf16 %v161_v30, %v154_v28  ;;  %v2258_v61 = vor.u32 %v2440_v60, %v2257_v59  ;;  %v1894_v4 = vor.u32 %v2347_v62, %v1891_v63  ;;  %v2345_v5 = vld [vmem:[#allocation5 + $0x14] sm:$0xf]  ;;  %v1883_v10 = vld [vmem:[#allocation5 + $0x18] sm:$0xf0] }
  0x4b   :  { %1030 = vmatmul.bf16.gmra.mxu3 %v2672_v9  ;;  %v2720_v40 = vpack.c.bf16 %v163_v34, %v156_v33  ;;  %v174_v12 = vld [vmem:[#allocation2 + $0x2d8] sm:$0xff]  ;;  %v168_v13 = vld [vmem:[#allocation2 + $0x2a8] sm:$0xff]  ;;  %v175_v14 = vld [vmem:[#allocation2 + $0x2e0] sm:$0xff] }
  0x4c   :  { %1214 = vmatpush.bf16.msrb.mxu3 %v1926_v19  ;;  %1171 = vmatpush.bf16.msrb.mxu2 %v2258_v61  ;;  %v176_v16 = vld [vmem:[#allocation2 + $0x2e8] sm:$0xff]  ;;  %v170_v17 = vld [vmem:[#allocation2 + $0x2b8] sm:$0xff]  ;;  %v177_v18 = vld [vmem:[#allocation2 + $0x2f0] sm:$0xff]  ;;  %v1886_v19 = vor.u32 %v2345_v5, %v1883_v10  ;;  %v2728_v21 = vpack.c.bf16 %v175_v14, %v168_v13 }
  0x4d   :  { %1071 = vmatpush.bf16.msrb.mxu0 %v2146_v51  ;;  %v2349_v51 = vld [vmem:[#allocation5 + $0x34] sm:$0xf]  ;;  %v2343_v23 = vld [vmem:[#allocation5 + $0x4] sm:$0xf]  ;;  %v1875_v28 = vld [vmem:[#allocation5 + $0x8] sm:$0xf0] }
  0x4e   :  { %1120 = vmatpush.bf16.msrb.mxu1 %v2210_v55  ;;  %v2424_v55 = vld [vmem:[#allocation5 + $0x284] sm:$0xf0]  ;;  %v1902_v58 = vor.u32 %v2349_v51, %v1899_v56  ;;  %v1878_v30 = vor.u32 %v2343_v23, %v1875_v28  ;;  %v2373_v31 = vld [vmem:[#allocation5 + $0xf4] sm:$0xf]  ;;  %v1995_v32 = vld [vmem:[#allocation5 + $0xf8] sm:$0xf0] }
  0x4f   :  { %v2194_v57 = vor.u32 %v2424_v55, %v2193_v54  ;;  %v1998_v33 = vor.u32 %v2373_v31, %v1995_v32  ;;  %v2389_v34 = vld [vmem:[#allocation5 + $0x174] sm:$0xf]  ;;  %v2059_v36 = vld [vmem:[#allocation5 + $0x178] sm:$0xf0]  ;;  %v188_v47 = vld [vmem:[#allocation2 + $0x348] sm:$0xff] }
  0x50   :  { %1215 = vmatpush.bf16.msrb.mxu3 %v1918_v29  ;;  %v2732_v29 = vpack.c.bf16 %v177_v18, %v170_v17  ;;  %v2062_v37 = vor.u32 %v2389_v34, %v2059_v36  ;;  %v182_v48 = vld [vmem:[#allocation2 + $0x318] sm:$0xff]  ;;  %v189_v51 = vld [vmem:[#allocation2 + $0x350] sm:$0xff]  ;;  %v184_v55 = vld [vmem:[#allocation2 + $0x328] sm:$0xff] }
  0x51   :  { %1072 = vmatpush.bf16.msrb.mxu0 %v2138_v11  ;;  %v167_v11 = vld [vmem:[#allocation2 + $0x2a0] sm:$0xff]  ;;  %v190_v54 = vld [vmem:[#allocation2 + $0x358] sm:$0xff]  ;;  %v1987_v62 = vld [vmem:[#allocation5 + $0xe8] sm:$0xf0] }
  0x52   :  { %1121 = vmatpush.bf16.msrb.mxu1 %v2202_v15  ;;  %v169_v15 = vld [vmem:[#allocation2 + $0x2b0] sm:$0xff]  ;;  %v2726_v20 = vpack.c.bf16 %v174_v12, %v167_v11  ;;  %3126 = vst [vmem:[#allocation16_spill] sm:$0xff] %v2732_v29  ;;  %v191_v56 = vld [vmem:[#allocation2 + $0x360] sm:$0xff]  ;;  %v2051_v5 = vld [vmem:[#allocation5 + $0x168] sm:$0xf0] }
  0x53   :  { %v2730_v22 = vpack.c.bf16 %v176_v16, %v169_v15  ;;  %v2744_v60 = vpack.c.bf16 %v191_v56, %v184_v55  ;;  %v2371_v61 = vld [vmem:[#allocation5 + $0xe4] sm:$0xf]  ;;  %v349_v11 = vld [vmem:[#allocation7] sm:$0x3]  ;;  %v94_v13 = vld [vmem:[#allocation2 + $0x58] sm:$0xff] }
  0x54   :  { %1216 = vmatpush.bf16.msrb.mxu3 %v1910_v41  ;;  %v181_v41 = vld [vmem:[#allocation2 + $0x310] sm:$0xff]  ;;  %v1990_v63 = vor.u32 %v2371_v61, %v1987_v62  ;;  %v87_v12 = vld [vmem:[#allocation2 + $0x20] sm:$0xff]  ;;  %v88_v14 = vld [vmem:[#allocation2 + $0x28] sm:$0xff]  ;;  %v2750_v15 = vperm.slane %v349_v11, 0 }
  0x55   :  { %1073 = vmatpush.bf16.msrb.mxu0 %v2130_v52  ;;  %3125 = vst [vmem:[#allocation15_spill] sm:$0xff] %v2730_v22  ;;  %v183_v52 = vld [vmem:[#allocation2 + $0x320] sm:$0xff]  ;;  %v89_v17 = vld [vmem:[#allocation2 + $0x30] sm:$0xff]  ;;  %v96_v18 = vld [vmem:[#allocation2 + $0x68] sm:$0xff] }
  0x56   :  { %1122 = vmatpush.bf16.msrb.mxu1 %v2194_v57  ;;  %v2738_v57 = vpack.c.bf16 %v188_v47, %v181_v41  ;;  %v2742_v59 = vpack.c.bf16 %v190_v54, %v183_v52  ;;  %3129 = vst [vmem:[#allocation19_spill] sm:$0xff] %v2744_v60  ;;  %v95_v16 = vld [vmem:[#allocation2 + $0x60] sm:$0xff]  ;;  %v2369_v34 = vld [vmem:[#allocation5 + $0xd4] sm:$0xf]  ;;  %v1979_v36 = vld [vmem:[#allocation5 + $0xd8] sm:$0xf0] }
  0x57   :  { %v2754_v28 = vpack.c.bf16 %v95_v16, %v88_v14  ;;  %v2385_v41 = vld [vmem:[#allocation5 + $0x154] sm:$0xf]  ;;  %v2043_v47 = vld [vmem:[#allocation5 + $0x158] sm:$0xf0]  ;;  %v103_v11 = vld [vmem:[#allocation2 + $0xa0] sm:$0xff] }
  0x58   :  { %888 = vmatmul.bf16.gmra.mxu0 %v2678_v24  ;;  %1217 = vmatpush.bf16.msrb.mxu3 %v1902_v58  ;;  %v2740_v58 = vpack.c.bf16 %v189_v51, %v182_v48  ;;  %3128 = vst [vmem:[#allocation18_spill] sm:$0xff] %v2742_v59  ;;  %v2046_v48 = vor.u32 %v2385_v41, %v2043_v47  ;;  %v1971_v41 = vld [vmem:[#allocation5 + $0xc8] sm:$0xf0] }
  0x59   :  { %937 = vmatmul.bf16.gmra.mxu1 %v2680_v25  ;;  %1262 = vmatpush.bf16.msra.mxu0 %v1998_v33  ;;  %3130 = vst [vmem:[#allocation20_spill] sm:$0xff] %v2754_v28 }
  0x5a   :  { %986 = vmatmul.bf16.gmra.mxu2 %v2682_v26  ;;  %1311 = vmatpush.bf16.msra.mxu1 %v2062_v37  ;;  %3127 = vst [vmem:[#allocation17_spill] sm:$0xff] %v2740_v58  ;;  %v1982_v37 = vor.u32 %v2369_v34, %v1979_v36 }
  0x5b   :  { %1035 = vmatmul.bf16.gmra.mxu3 %v2684_v27 }
  0x5c   :  { %1218 = vmatpush.bf16.msrb.mxu3 %v1894_v4  ;;  %v2387_v4 = vld [vmem:[#allocation5 + $0x164] sm:$0xf] }
  0x5d   :  { %v2054_v10 = vor.u32 %v2387_v4, %v2051_v5  ;;  %1263 = vmatpush.bf16.msra.mxu0 %v1990_v63  ;;  %v101_v4 = vld [vmem:[#allocation2 + $0x90] sm:$0xff]  ;;  %v108_v5 = vld [vmem:[#allocation2 + $0xc8] sm:$0xff] }
  0x5e   :  { %v2767_v14 = vpack.c.bf16 %v108_v5, %v101_v4 }
  0x5f   :  { %1312 = vmatpush.bf16.msra.mxu1 %v2054_v10  ;;  %v102_v10 = vld [vmem:[#allocation2 + $0x98] sm:$0xff] }
  0x60   :  { %1219 = vmatpush.bf16.msrb.mxu3 %v1886_v19  ;;  %v2752_v19 = vpack.c.bf16 %v94_v13, %v87_v12  ;;  %v110_v12 = vld [vmem:[#allocation2 + $0xd8] sm:$0xff] }
  0x61   :  { %1264 = vmatpush.bf16.msra.mxu0 %v1982_v37  ;;  %v2367_v37 = vld [vmem:[#allocation5 + $0xc4] sm:$0xf] }
  0x62   :  { %v1974_v47 = vor.u32 %v2367_v37, %v1971_v41 }
  0x63   :  { %1313 = vmatpush.bf16.msra.mxu1 %v2046_v48  ;;  %v2383_v48 = vld [vmem:[#allocation5 + $0x144] sm:$0xf] }
  0x64   :  { %1220 = vmatpush.bf16.msrb.mxu3 %v1878_v30  ;;  %v2756_v30 = vpack.c.bf16 %v96_v18, %v89_v17 }
  0x65   :  { %1265 = vmatpush.bf16.msra.mxu0 %v1974_v47 }
  0x66   :  { %3131 = vst [vmem:[#allocation21_spill] sm:$0xff] %v2756_v30 }
  0x68   :  { %893 = vmatmul.bf16.gmra.mxu0 %v2690_v42 }
  0x69   :  { %942 = vmatmul.bf16.gmra.mxu1 %v2692_v43 }
  0x6a   :  { %991 = vmatmul.bf16.gmra.mxu2 %v2694_v44 }
  0x6b   :  { %1040 = vmatmul.bf16.gmra.mxu3 %v2696_v46 }
  0x78   :  { %898 = vmatmul.bf16.gmra.mxu0 %v2702_v0 }
  0x79   :  { %947 = vmatmul.bf16.gmra.mxu1 %v2704_v1 }
  0x7a   :  { %996 = vmatmul.bf16.gmra.mxu2 %v2706_v2 }
  0x7b   :  { %1045 = vmatmul.bf16.gmra.mxu3 %v2708_v3 }
  0x88   :  { %903 = vmatmul.bf16.gmra.mxu0 %v2714_v35 }
  0x89   :  { %952 = vmatmul.bf16.gmra.mxu1 %v2716_v38 }
  0x8a   :  { %1001 = vmatmul.bf16.gmra.mxu2 %v2718_v39 }
  0x8b   :  { %1050 = vmatmul.bf16.gmra.mxu3 %v2720_v40 }
  0x98   :  { %908 = vmatmul.bf16.gmra.mxu0 %v2726_v20 }
  0x99   :  { %957 = vmatmul.bf16.gmra.mxu1 %v2728_v21 }
  0x9a   :  { %1006 = vmatmul.bf16.gmra.mxu2 %v2730_v22 }
  0x9b   :  { %1055 = vmatmul.bf16.gmra.mxu3 %v2732_v29  ;;  %v2131_v29 = vld [vmem:[#allocation5 + $0x208] sm:$0xf0] }
  0xa8   :  { %913 = vmatmul.bf16.gmra.mxu0 %v2738_v57 }
  0xa9   :  { %962 = vmatmul.bf16.gmra.mxu1 %v2740_v58 }
  0xaa   :  { %1011 = vmatmul.bf16.gmra.mxu2 %v2742_v59 }
  0xab   :  { %1060 = vmatmul.bf16.gmra.mxu3 %v2744_v60 }
  0xb5   :  { %v879_v23 = vpop.f32.mrf.mxu0 }
  0xb6   :  { %v880_v31 = vadd.f32 %v879_v23, %v2750_v15  ;;  %v928_v32 = vpop.f32.mrf.mxu1 }
  0xb8   :  { %v929_v33 = vadd.f32 %v928_v32, %v880_v31  ;;  %1074 = vmatmul.bf16.vlgmr.msrb.gmra.mxu0 %v2752_v19  ;;  %v2771_v31 = vpack.c.bf16 %v110_v12, %v103_v11  ;;  %v122_v11 = vld [vmem:[#allocation2 + $0x138] sm:$0xff]  ;;  %v116_v12 = vld [vmem:[#allocation2 + $0x108] sm:$0xff] }
  0xb9   :  { %1123 = vmatmul.bf16.vlgmr.msrb.gmra.mxu1 %v2754_v28 }
  0xba   :  { %2263 = vmatmul.msk.bf16.vlgmr.msrb.gmra.mxu2 %vm845_vm0, %v2756_v30  ;;  %3133 = vst [vmem:[#allocation23_spill] sm:$0xff] %v2771_v31 }
  0xbb   :  { %1221 = vmatmul.bf16.vlgmr.msrb.gmra.mxu3 %v2654_v45  ;;  %v109_v45 = vld [vmem:[#allocation2 + $0xd0] sm:$0xff] }
  0xbc   :  { %v2769_v23 = vpack.c.bf16 %v109_v45, %v102_v10  ;;  %v115_v45 = vld [vmem:[#allocation2 + $0x100] sm:$0xff] }
  0xbd   :  { %v977_v51 = vpop.f32.mrf.mxu2  ;;  %v881_v54 = vpop.f32.mrf.mxu0 }
  0xbe   :  { %v978_v52 = vadd.f32 %v977_v51, %v929_v33  ;;  %v1026_v55 = vpop.f32.mrf.mxu3  ;;  %v882_v56 = vadd.f32 %v881_v54, %v2750_v15  ;;  %v930_v61 = vpop.f32.mrf.mxu1  ;;  %3132 = vst [vmem:[#allocation22_spill] sm:$0xff] %v2769_v23  ;;  %v2035_v51 = vld [vmem:[#allocation5 + $0x148] sm:$0xf0] }
  0xc0   :  { %v2765_v62 = vadd.f32 %v1026_v55, %v978_v52  ;;  %v931_v63 = vadd.f32 %v930_v61, %v882_v56  ;;  %v2038_v52 = vor.u32 %v2383_v48, %v2035_v51 }
  0xc2   :  { %1314 = vmatpush.bf16.msra.mxu1 %v2038_v52 }
  0xc5   :  { %v979_v13 = vpop.f32.mrf.mxu2  ;;  %v884_v17 = vpop.f32.mrf.mxu0 }
  0xc6   :  { %v980_v16 = vadd.f32 %v979_v13, %v931_v63  ;;  %v1028_v18 = vpop.f32.mrf.mxu3  ;;  %v885_v32 = vadd.f32 %v884_v17, %v2750_v15  ;;  %v933_v33 = vpop.f32.mrf.mxu1  ;;  %v117_v13 = vld [vmem:[#allocation2 + $0x110] sm:$0xff] }
  0xc8   :  { %v2774_v34 = vadd.f32 %v1028_v18, %v980_v16  ;;  %v934_v36 = vadd.f32 %v933_v33, %v885_v32  ;;  %1079 = vmatmul.bf16.gmra.mxu0 %v2767_v14  ;;  %v124_v16 = vld [vmem:[#allocation2 + $0x148] sm:$0xff]  ;;  %v2784_v18 = vpack.c.bf16 %v122_v11, %v115_v45 }
  0xc9   :  { %1128 = vmatmul.bf16.gmra.mxu1 %v2769_v23  ;;  %v2788_v41 = vpack.c.bf16 %v124_v16, %v117_v13 }
  0xca   :  { %2264 = vmatmul.msk.bf16.gmra.mxu2 %vm845_vm0, %v2771_v31 }
  0xcb   :  { %1226 = vmatmul.bf16.gmra.mxu3 %v2666_v6  ;;  %v123_v6 = vld [vmem:[#allocation2 + $0x140] sm:$0xff]  ;;  %3135 = vst [vmem:[#allocation25_spill] sm:$0xff] %v2788_v41 }
  0xcc   :  { %v2786_v37 = vpack.c.bf16 %v123_v6, %v116_v12 }
  0xcd   :  { %v982_v54 = vpop.f32.mrf.mxu2  ;;  %v886_v56 = vpop.f32.mrf.mxu0 }
  0xce   :  { %v983_v55 = vadd.f32 %v982_v54, %v934_v36  ;;  %v1031_v61 = vpop.f32.mrf.mxu3  ;;  %v887_v63 = vadd.f32 %v886_v56, %v2750_v15  ;;  %v935_v4 = vpop.f32.mrf.mxu1  ;;  %3134 = vst [vmem:[#allocation24_spill] sm:$0xff] %v2786_v37  ;;  %v2365_v54 = vld [vmem:[#allocation5 + $0xb4] sm:$0xf] }
  0xd0   :  { %v2782_v5 = vadd.f32 %v1031_v61, %v983_v55  ;;  %v936_v10 = vadd.f32 %v935_v4, %v887_v63  ;;  %v1963_v55 = vld [vmem:[#allocation5 + $0xb8] sm:$0xf0]  ;;  %v2381_v61 = vld [vmem:[#allocation5 + $0x134] sm:$0xf] }
  0xd1   :  { %v1966_v56 = vor.u32 %v2365_v54, %v1963_v55  ;;  %v2027_v63 = vld [vmem:[#allocation5 + $0x138] sm:$0xf0] }
  0xd2   :  { %v2030_v4 = vor.u32 %v2381_v61, %v2027_v63 }
  0xd3   :  { %1266 = vmatpush.bf16.msra.mxu0 %v1966_v56 }
  0xd4   :  { %1315 = vmatpush.bf16.msra.mxu1 %v2030_v4 }
  0xd5   :  { %v984_v17 = vpop.f32.mrf.mxu2  ;;  %v889_v33 = vpop.f32.mrf.mxu0 }
  0xd6   :  { %v985_v32 = vadd.f32 %v984_v17, %v936_v10  ;;  %v1033_v36 = vpop.f32.mrf.mxu3  ;;  %v890_v47 = vadd.f32 %v889_v33, %v2750_v15  ;;  %v938_v48 = vpop.f32.mrf.mxu1  ;;  %v136_v33 = vld [vmem:[#allocation2 + $0x1a8] sm:$0xff] }
  0xd8   :  { %v2791_v51 = vadd.f32 %v1033_v36, %v985_v32  ;;  %v939_v52 = vadd.f32 %v938_v48, %v890_v47  ;;  %1084 = vmatmul.bf16.gmra.mxu0 %v2784_v18  ;;  %v129_v32 = vld [vmem:[#allocation2 + $0x170] sm:$0xff]  ;;  %v130_v36 = vld [vmem:[#allocation2 + $0x178] sm:$0xff]  ;;  %v131_v47 = vld [vmem:[#allocation2 + $0x180] sm:$0xff] }
  0xd9   :  { %1133 = vmatmul.bf16.gmra.mxu1 %v2786_v37  ;;  %v138_v48 = vld [vmem:[#allocation2 + $0x1b8] sm:$0xff]  ;;  %v2801_v55 = vpack.c.bf16 %v136_v33, %v129_v32  ;;  %v2379_v32 = vld [vmem:[#allocation5 + $0x124] sm:$0xf]  ;;  %v2019_v33 = vld [vmem:[#allocation5 + $0x128] sm:$0xf0] }
  0xda   :  { %2265 = vmatmul.msk.bf16.gmra.mxu2 %vm845_vm0, %v2788_v41  ;;  %v2805_v4 = vpack.c.bf16 %v138_v48, %v131_v47  ;;  %v2123_v37 = vld [vmem:[#allocation5 + $0x1f8] sm:$0xf0] }
  0xdb   :  { %1231 = vmatmul.bf16.gmra.mxu3 %v2678_v24  ;;  %v137_v24 = vld [vmem:[#allocation2 + $0x1b0] sm:$0xff] }
  0xdc   :  { %v2803_v63 = vpack.c.bf16 %v137_v24, %v130_v36  ;;  %3137 = vst [vmem:[#allocation27_spill] sm:$0xff] %v2805_v4  ;;  %v2022_v36 = vor.u32 %v2379_v32, %v2019_v33 }
  0xdd   :  { %v987_v10 = vpop.f32.mrf.mxu2  ;;  %v891_v11 = vpop.f32.mrf.mxu0 }
  0xde   :  { %v988_v45 = vadd.f32 %v987_v10, %v939_v52  ;;  %v1036_v12 = vpop.f32.mrf.mxu3  ;;  %v892_v6 = vadd.f32 %v891_v11, %v2750_v15  ;;  %v940_v13 = vpop.f32.mrf.mxu1  ;;  %3136 = vst [vmem:[#allocation26_spill] sm:$0xff] %v2803_v63  ;;  %1316 = vmatpush.bf16.msra.mxu1 %v2022_v36 }
  0xe0   :  { %v2799_v16 = vadd.f32 %v1036_v12, %v988_v45  ;;  %v941_v17 = vadd.f32 %v940_v13, %v892_v6  ;;  %v2363_v6 = vld [vmem:[#allocation5 + $0xa4] sm:$0xf]  ;;  %v1955_v13 = vld [vmem:[#allocation5 + $0xa8] sm:$0xf0] }
  0xe5   :  { %v989_v54 = vpop.f32.mrf.mxu2  ;;  %v894_v52 = vpop.f32.mrf.mxu0 }
  0xe6   :  { %v990_v56 = vadd.f32 %v989_v54, %v941_v17  ;;  %v1038_v61 = vpop.f32.mrf.mxu3  ;;  %v895_v10 = vadd.f32 %v894_v52, %v2750_v15  ;;  %v943_v45 = vpop.f32.mrf.mxu1  ;;  %v1958_v17 = vor.u32 %v2363_v6, %v1955_v13  ;;  %v145_v6 = vld [vmem:[#allocation2 + $0x1f0] sm:$0xff]  ;;  %v152_v13 = vld [vmem:[#allocation2 + $0x228] sm:$0xff] }
  0xe7   :  { %v2822_v36 = vpack.c.bf16 %v152_v13, %v145_v6  ;;  %v2011_v6 = vld [vmem:[#allocation5 + $0x118] sm:$0xf0] }
  0xe8   :  { %v2808_v11 = vadd.f32 %v1038_v61, %v990_v56  ;;  %v944_v12 = vadd.f32 %v943_v45, %v895_v10  ;;  %1089 = vmatmul.bf16.gmra.mxu0 %v2801_v55  ;;  %v143_v45 = vld [vmem:[#allocation2 + $0x1e0] sm:$0xff]  ;;  %v2187_v13 = vld [vmem:[#allocation5 + $0x278] sm:$0xf0] }
  0xe9   :  { %1138 = vmatmul.bf16.gmra.mxu1 %v2803_v63  ;;  %1267 = vmatpush.bf16.msra.mxu0 %v1958_v17  ;;  %v144_v63 = vld [vmem:[#allocation2 + $0x1e8] sm:$0xff]  ;;  %3139 = vst [vmem:[#allocation29_spill] sm:$0xff] %v2822_v36 }
  0xea   :  { %2266 = vmatmul.msk.bf16.gmra.mxu2 %vm845_vm0, %v2805_v4  ;;  %v150_v4 = vld [vmem:[#allocation2 + $0x218] sm:$0xff] }
  0xeb   :  { %1236 = vmatmul.bf16.gmra.mxu3 %v2690_v42  ;;  %v151_v42 = vld [vmem:[#allocation2 + $0x220] sm:$0xff]  ;;  %v2818_v32 = vpack.c.bf16 %v150_v4, %v143_v45 }
  0xed   :  { %v992_v24 = vpop.f32.mrf.mxu2  ;;  %v896_v48 = vpop.f32.mrf.mxu0 }
  0xee   :  { %v993_v47 = vadd.f32 %v992_v24, %v944_v12  ;;  %v1041_v54 = vpop.f32.mrf.mxu3  ;;  %v897_v56 = vadd.f32 %v896_v48, %v2750_v15  ;;  %v945_v52 = vpop.f32.mrf.mxu1  ;;  %v2820_v24 = vpack.c.bf16 %v151_v42, %v144_v63  ;;  %v1947_v63 = vld [vmem:[#allocation5 + $0x98] sm:$0xf0]  ;;  %v2377_v42 = vld [vmem:[#allocation5 + $0x114] sm:$0xf] }
  0xf0   :  { %v2816_v61 = vadd.f32 %v1041_v54, %v993_v47  ;;  %v946_v10 = vadd.f32 %v945_v52, %v897_v56  ;;  %3138 = vst [vmem:[#allocation28_spill] sm:$0xff] %v2820_v24  ;;  %v2405_v52 = vld [vmem:[#allocation5 + $0x1f4] sm:$0xf] }
  0xf1   :  { %v2126_v4 = vor.u32 %v2405_v52, %v2123_v37  ;;  %v2419_v37 = vld [vmem:[#allocation5 + $0x264] sm:$0xf]  ;;  %v2179_v52 = vld [vmem:[#allocation5 + $0x268] sm:$0xf0] }
  0xf3   :  { %1360 = vmatpush.bf16.msra.mxu2 %v2126_v4  ;;  %v2401_v4 = vld [vmem:[#allocation5 + $0x1d4] sm:$0xf] }
  0xf5   :  { %v994_v41 = vpop.f32.mrf.mxu2  ;;  %v899_v12 = vpop.f32.mrf.mxu0 }
  0xf6   :  { %v995_v17 = vadd.f32 %v994_v41, %v946_v10  ;;  %v1043_v33 = vpop.f32.mrf.mxu3  ;;  %v900_v47 = vadd.f32 %v899_v12, %v2750_v15  ;;  %v948_v48 = vpop.f32.mrf.mxu1  ;;  %v2361_v41 = vld [vmem:[#allocation5 + $0x94] sm:$0xf] }
  0xf7   :  { %v2421_v10 = vld [vmem:[#allocation5 + $0x274] sm:$0xf]  ;;  %v1950_v45 = vor.u32 %v2361_v41, %v1947_v63  ;;  %v2182_v63 = vor.u32 %v2419_v37, %v2179_v52  ;;  %v2099_v37 = vld [vmem:[#allocation5 + $0x1c8] sm:$0xf0] }
  0xf8   :  { %v2825_v54 = vadd.f32 %v1043_v33, %v995_v17  ;;  %v949_v56 = vadd.f32 %v948_v48, %v900_v47  ;;  %1094 = vmatmul.bf16.gmra.mxu0 %v2818_v32  ;;  %v2014_v17 = vor.u32 %v2377_v42, %v2011_v6  ;;  %v2190_v12 = vor.u32 %v2421_v10, %v2187_v13  ;;  %v2403_v33 = vld [vmem:[#allocation5 + $0x1e4] sm:$0xf]  ;;  %v2115_v47 = vld [vmem:[#allocation5 + $0x1e8] sm:$0xf0]  ;;  %v2107_v10 = vld [vmem:[#allocation5 + $0x1d8] sm:$0xf0] }
  0xf9   :  { %1143 = vmatmul.bf16.gmra.mxu1 %v2820_v24  ;;  %1268 = vmatpush.bf16.msra.mxu0 %v1950_v45  ;;  %v2118_v24 = vor.u32 %v2403_v33, %v2115_v47  ;;  %v157_v6 = vld [vmem:[#allocation2 + $0x250] sm:$0xff]  ;;  %v164_v45 = vld [vmem:[#allocation2 + $0x288] sm:$0xff]  ;;  %v2110_v13 = vor.u32 %v2401_v4, %v2107_v10  ;;  %v159_v47 = vld [vmem:[#allocation2 + $0x260] sm:$0xff] }
  0xfa   :  { %2267 = vmatmul.msk.bf16.gmra.mxu2 %vm845_vm0, %v2822_v36  ;;  %1317 = vmatpush.bf16.msra.mxu1 %v2014_v17  ;;  %v2417_v33 = vld [vmem:[#allocation5 + $0x254] sm:$0xf]  ;;  %v2171_v17 = vld [vmem:[#allocation5 + $0x258] sm:$0xf0]  ;;  %v2163_v10 = vld [vmem:[#allocation5 + $0x248] sm:$0xf0] }
  0xfb   :  { %1241 = vmatmul.bf16.gmra.mxu3 %v2702_v0  ;;  %1361 = vmatpush.bf16.msra.mxu2 %v2118_v24  ;;  %v2174_v28 = vor.u32 %v2417_v33, %v2171_v17 }
  0xfc   :  { %1409 = vmatpush.bf16.msra.mxu3 %v2190_v12  ;;  %v165_v12 = vld [vmem:[#allocation2 + $0x290] sm:$0xff] }
  0xfd   :  { %v997_v48 = vpop.f32.mrf.mxu2  ;;  %v901_v36 = vpop.f32.mrf.mxu0 }
  0xfe   :  { %v998_v31 = vadd.f32 %v997_v48, %v949_v56  ;;  %v1046_v23 = vpop.f32.mrf.mxu3  ;;  %v902_v0 = vadd.f32 %v901_v36, %v2750_v15  ;;  %v950_v41 = vpop.f32.mrf.mxu1  ;;  %v158_v56 = vld [vmem:[#allocation2 + $0x258] sm:$0xff]  ;;  %v2399_v36 = vld [vmem:[#allocation5 + $0x1c4] sm:$0xf] }
  0xff   :  { %v166_v48 = vld [vmem:[#allocation2 + $0x298] sm:$0xff]  ;;  %1362 = vmatpush.bf16.msra.mxu2 %v2110_v13  ;;  %v2102_v24 = vor.u32 %v2399_v36, %v2099_v37  ;;  %v2837_v60 = vpack.c.bf16 %v165_v12, %v158_v56  ;;  %v1939_v56 = vld [vmem:[#allocation5 + $0x88] sm:$0xf0]  ;;  %v2375_v36 = vld [vmem:[#allocation5 + $0x104] sm:$0xf] }
 0x100   :  { %v2833_v30 = vadd.f32 %v1046_v23, %v998_v31  ;;  %v951_v42 = vadd.f32 %v950_v41, %v902_v0  ;;  %1410 = vmatpush.bf16.msra.mxu3 %v2182_v63  ;;  %v2835_v31 = vpack.c.bf16 %v164_v45, %v157_v6  ;;  %v2839_v4 = vpack.c.bf16 %v166_v48, %v159_v47  ;;  %v2415_v63 = vld [vmem:[#allocation5 + $0x244] sm:$0xf]  ;;  %v2091_v45 = vld [vmem:[#allocation5 + $0x1b8] sm:$0xf0]  ;;  %v2413_v47 = vld [vmem:[#allocation5 + $0x234] sm:$0xf] }
 0x101   :  { %3140 = vst [vmem:[#allocation30_spill] sm:$0xff] %v2837_v60  ;;  %v2166_v17 = vor.u32 %v2415_v63, %v2163_v10  ;;  %v2003_v37 = vld [vmem:[#allocation5 + $0x108] sm:$0xf0] }
 0x102   :  { %3141 = vst [vmem:[#allocation31_spill] sm:$0xff] %v2839_v4 }
 0x103   :  { %1363 = vmatpush.bf16.msra.mxu2 %v2102_v24 }
 0x104   :  { %1411 = vmatpush.bf16.msra.mxu3 %v2174_v28  ;;  %v2359_v28 = vld [vmem:[#allocation5 + $0x84] sm:$0xf] }
 0x105   :  { %v999_v23 = vpop.f32.mrf.mxu2  ;;  %v904_v0 = vpop.f32.mrf.mxu0  ;;  %v1942_v48 = vor.u32 %v2359_v28, %v1939_v56 }
 0x106   :  { %v1000_v52 = vadd.f32 %v999_v23, %v951_v42  ;;  %v1048_v41 = vpop.f32.mrf.mxu3  ;;  %v905_v59 = vadd.f32 %v904_v0, %v2750_v15  ;;  %v953_v33 = vpop.f32.mrf.mxu1  ;;  %v2397_v42 = vld [vmem:[#allocation5 + $0x1b4] sm:$0xf]  ;;  %v2155_v23 = vld [vmem:[#allocation5 + $0x238] sm:$0xf0]  ;;  %v2083_v0 = vld [vmem:[#allocation5 + $0x1a8] sm:$0xf0] }
 0x107   :  { %v2094_v12 = vor.u32 %v2397_v42, %v2091_v45  ;;  %v2158_v24 = vor.u32 %v2413_v47, %v2155_v23  ;;  %1269 = vmatpush.bf16.msra.mxu0 %v1942_v48  ;;  %v2411_v42 = vld [vmem:[#allocation5 + $0x224] sm:$0xf]  ;;  %v2147_v45 = vld [vmem:[#allocation5 + $0x228] sm:$0xf0]  ;;  %v2075_v47 = vld [vmem:[#allocation5 + $0x198] sm:$0xf0] }
 0x108   :  { %v2842_v13 = vadd.f32 %v1048_v41, %v1000_v52  ;;  %v954_v6 = vadd.f32 %v953_v33, %v905_v59  ;;  %1099 = vmatmul.bf16.gmra.mxu0 %v2835_v31  ;;  %1412 = vmatpush.bf16.msra.mxu3 %v2166_v17  ;;  %v2006_v59 = vor.u32 %v2375_v36, %v2003_v37  ;;  %v2395_v52 = vld [vmem:[#allocation5 + $0x1a4] sm:$0xf]  ;;  %v178_v48 = vld [vmem:[#allocation2 + $0x2f8] sm:$0xff] }
 0x109   :  { %1148 = vmatmul.bf16.gmra.mxu1 %v2837_v60  ;;  %1364 = vmatpush.bf16.msra.mxu2 %v2094_v12  ;;  %v2086_v63 = vor.u32 %v2395_v52, %v2083_v0  ;;  %v2150_v17 = vor.u32 %v2411_v42, %v2147_v45  ;;  %v2393_v12 = vld [vmem:[#allocation5 + $0x194] sm:$0xf]  ;;  %v171_v37 = vld [vmem:[#allocation2 + $0x2c0] sm:$0xff]  ;;  %v2139_v0 = vld [vmem:[#allocation5 + $0x218] sm:$0xf0] }
 0x10a   :  { %2268 = vmatmul.msk.bf16.gmra.mxu2 %vm845_vm0, %v2839_v4  ;;  %1318 = vmatpush.bf16.msra.mxu1 %v2006_v59  ;;  %v2078_v23 = vor.u32 %v2393_v12, %v2075_v47  ;;  %v2409_v52 = vld [vmem:[#allocation5 + $0x214] sm:$0xf]  ;;  %v179_v59 = vld [vmem:[#allocation2 + $0x300] sm:$0xff]  ;;  %v180_v60 = vld [vmem:[#allocation2 + $0x308] sm:$0xff] }
 0x10b   :  { %1246 = vmatmul.bf16.gmra.mxu3 %v2714_v35  ;;  %v2407_v47 = vld [vmem:[#allocation5 + $0x204] sm:$0xf] }
 0x10c   :  { %1413 = vmatpush.bf16.msra.mxu3 %v2158_v24 }
 0x10d   :  { %v1002_v41 = vpop.f32.mrf.mxu2  ;;  %v906_v33 = vpop.f32.mrf.mxu0  ;;  %1365 = vmatpush.bf16.msra.mxu2 %v2086_v63  ;;  %v2852_v63 = vpack.c.bf16 %v178_v48, %v171_v37 }
 0x10e   :  { %v1003_v10 = vadd.f32 %v1002_v41, %v954_v6  ;;  %v1051_v4 = vpop.f32.mrf.mxu3  ;;  %v907_v35 = vadd.f32 %v906_v33, %v2750_v15  ;;  %v955_v28 = vpop.f32.mrf.mxu1  ;;  %v172_v6 = vld [vmem:[#allocation2 + $0x2c8] sm:$0xff]  ;;  %v173_v41 = vld [vmem:[#allocation2 + $0x2d0] sm:$0xff]  ;;  %v2142_v33 = vor.u32 %v2409_v52, %v2139_v0  ;;  %v2134_v52 = vor.u32 %v2407_v47, %v2131_v29  ;;  %v187_v47 = vld [vmem:[#allocation2 + $0x340] sm:$0xff] }
 0x10f   :  { %v2854_v58 = vpack.c.bf16 %v179_v59, %v172_v6  ;;  %v2856_v12 = vpack.c.bf16 %v180_v60, %v173_v41  ;;  %v2437_v60 = vld [vmem:[#allocation5 + $0x2f4] sm:$0xf]  ;;  %v2439_v6 = vld [vmem:[#allocation5 + $0x304] sm:$0xf]  ;;  %v2259_v0 = vld [vmem:[#allocation5 + $0x308] sm:$0xf0] }
 0x110   :  { %v2850_v56 = vadd.f32 %v1051_v4, %v1003_v10  ;;  %v956_v36 = vadd.f32 %v955_v28, %v907_v35  ;;  %1414 = vmatpush.bf16.msra.mxu3 %v2150_v17  ;;  %v2391_v4 = vld [vmem:[#allocation5 + $0x184] sm:$0xf]  ;;  %v2067_v10 = vld [vmem:[#allocation5 + $0x188] sm:$0xf0]  ;;  %v2262_v59 = vor.u32 %v2439_v6, %v2259_v0 }
 0x111   :  { %1366 = vmatpush.bf16.msra.mxu2 %v2078_v23  ;;  %v2070_v42 = vor.u32 %v2391_v4, %v2067_v10 }
 0x112   :  { %1514 = vmatpush.bf16.msrb.mxu1 %v2262_v59 }
 0x114   :  { %1415 = vmatpush.bf16.msra.mxu3 %v2142_v33 }
 0x115   :  { %v1004_v24 = vpop.f32.mrf.mxu2  ;;  %v909_v35 = vpop.f32.mrf.mxu0  ;;  %1367 = vmatpush.bf16.msra.mxu2 %v2070_v42 }
 0x116   :  { %v1005_v45 = vadd.f32 %v1004_v24, %v956_v36  ;;  %v1053_v28 = vpop.f32.mrf.mxu3  ;;  %v910_v22 = vadd.f32 %v909_v35, %v2750_v15  ;;  %v958_v17 = vpop.f32.mrf.mxu1  ;;  %v2251_v36 = vld [vmem:[#allocation5 + $0x2f8] sm:$0xf0]  ;;  %v192_v35 = vld [vmem:[#allocation2 + $0x368] sm:$0xff] }
 0x117   :  { %v2254_v48 = vor.u32 %v2437_v60, %v2251_v36 }
 0x118   :  { %v2859_v23 = vadd.f32 %v1053_v28, %v1005_v45  ;;  %v959_v37 = vadd.f32 %v958_v17, %v910_v22  ;;  %1104 = vmatmul.bf16.gmra.mxu0 %v2852_v63  ;;  %1416 = vmatpush.bf16.msra.mxu3 %v2134_v52  ;;  %v185_v45 = vld [vmem:[#allocation2 + $0x330] sm:$0xff]  ;;  %v194_v17 = vld [vmem:[#allocation2 + $0x378] sm:$0xff] }
 0x119   :  { %1153 = vmatmul.bf16.gmra.mxu1 %v2854_v58  ;;  %1458 = vmatpush.bf16.msrb.mxu0 %v2254_v48  ;;  %v193_v28 = vld [vmem:[#allocation2 + $0x370] sm:$0xff]  ;;  %v2869_v60 = vpack.c.bf16 %v192_v35, %v185_v45  ;;  %v2873_v0 = vpack.c.bf16 %v194_v17, %v187_v47 }
 0x11a   :  { %2269 = vmatmul.msk.bf16.gmra.mxu2 %vm845_vm0, %v2856_v12 }
 0x11b   :  { %1251 = vmatmul.bf16.gmra.mxu3 %v2726_v20  ;;  %v186_v20 = vld [vmem:[#allocation2 + $0x338] sm:$0xff]  ;;  %3142 = vst [vmem:[#allocation32_spill] sm:$0xff] %v2873_v0 }
 0x11c   :  { %v2871_v6 = vpack.c.bf16 %v193_v28, %v186_v20 }
 0x11d   :  { %v1007_v41 = vpop.f32.mrf.mxu2  ;;  %v911_v22 = vpop.f32.mrf.mxu0 }
 0x11e   :  { %v1008_v29 = vadd.f32 %v1007_v41, %v959_v37  ;;  %v1056_v33 = vpop.f32.mrf.mxu3  ;;  %v912_v4 = vadd.f32 %v911_v22, %v2750_v15  ;;  %v960_v10 = vpop.f32.mrf.mxu1 }
 0x120   :  { %v2867_v24 = vadd.f32 %v1056_v33, %v1008_v29  ;;  %v961_v42 = vadd.f32 %v960_v10, %v912_v4  ;;  %v2435_v33 = vld [vmem:[#allocation5 + $0x2e4] sm:$0xf]  ;;  %v2243_v4 = vld [vmem:[#allocation5 + $0x2e8] sm:$0xf0] }
 0x121   :  { %v2246_v10 = vor.u32 %v2435_v33, %v2243_v4 }
 0x123   :  { %1459 = vmatpush.bf16.msrb.mxu0 %v2246_v10 }
 0x125   :  { %v1009_v52 = vpop.f32.mrf.mxu2  ;;  %v914_v37 = vpop.f32.mrf.mxu0 }
 0x126   :  { %v1010_v36 = vadd.f32 %v1009_v52, %v961_v42  ;;  %v1058_v48 = vpop.f32.mrf.mxu3  ;;  %v915_v59 = vadd.f32 %v914_v37, %v2750_v15  ;;  %v963_v41 = vpop.f32.mrf.mxu1 }
 0x128   :  { %v2876_v29 = vadd.f32 %v1058_v48, %v1010_v36  ;;  %v964_v22 = vadd.f32 %v963_v41, %v915_v59  ;;  %1109 = vmatmul.bf16.gmra.mxu0 %v2869_v60 }
 0x129   :  { %1158 = vmatmul.bf16.gmra.mxu1 %v2871_v6 }
 0x12a   :  { %2270 = vmatmul.msk.bf16.gmra.mxu2 %vm845_vm0, %v2873_v0 }
 0x12b   :  { %1256 = vmatmul.bf16.gmra.mxu3 %v2738_v57 }
 0x12d   :  { %v1012_v42 = vpop.f32.mrf.mxu2  ;;  %v916_v35 = vpop.f32.mrf.mxu0 }
 0x12e   :  { %v1013_v45 = vadd.f32 %v1012_v42, %v964_v22  ;;  %v1061_v20 = vpop.f32.mrf.mxu3  ;;  %v917_v28 = vadd.f32 %v916_v35, %v2750_v15  ;;  %v965_v47 = vpop.f32.mrf.mxu1  ;;  %v2433_v15 = vld [vmem:[#allocation5 + $0x2d4] sm:$0xf]  ;;  %v2235_v22 = vld [vmem:[#allocation5 + $0x2d8] sm:$0xf0] }
 0x12f   :  { %v2238_v4 = vor.u32 %v2433_v15, %v2235_v22 }
 0x130   :  { %v2884_v17 = vadd.f32 %v1061_v20, %v1013_v45  ;;  %v966_v52 = vadd.f32 %v965_v47, %v917_v28 }
 0x131   :  { %1460 = vmatpush.bf16.msrb.mxu0 %v2238_v4 }
 0x135   :  { %v1014_v36 = vpop.f32.mrf.mxu2  ;;  %v1075_v59 = vpop.f32.mrf.mxu0 }
 0x136   :  { %v1015_v37 = vadd.f32 %v1014_v36, %v966_v52  ;;  %v1063_v48 = vpop.f32.mrf.mxu3  ;;  %v1076_v41 = vadd.f32 %v1075_v59, %v2765_v62  ;;  %v1124_v0 = vpop.f32.mrf.mxu1 }
 0x138   :  { %v2887_v57 = vadd.f32 %v1063_v48, %v1015_v37  ;;  %v1125_v33 = vadd.f32 %v1124_v0, %v1076_v41  ;;  %1270 = vmatmul.bf16.vlgmr.msra.gmra.mxu0 %v2656_v49  ;;  %v2227_v37 = vld [vmem:[#allocation5 + $0x2c8] sm:$0xf0] }
 0x139   :  { %1319 = vmatmul.bf16.vlgmr.msra.gmra.mxu1 %v2658_v50 }
 0x13a   :  { %1368 = vmatmul.bf16.vlgmr.msra.gmra.mxu2 %v2660_v53 }
 0x13b   :  { %1417 = vmatmul.bf16.vlgmr.msra.gmra.mxu3 %v2752_v19 }
 0x13d   :  { %v1173_v10 = vpop.f32.mrf.mxu2  ;;  %v1077_v45 = vpop.f32.mrf.mxu0 }
 0x13e   :  { %v1174_v42 = vadd.f32 %v1173_v10, %v1125_v33  ;;  %v1078_v62 = vadd.f32 %v1077_v45, %v2774_v34  ;;  %v1126_v35 = vpop.f32.mrf.mxu1  ;;  %v2431_v34 = vld [vmem:[#allocation5 + $0x2c4] sm:$0xf] }
 0x13f   :  { %v2230_v48 = vor.u32 %v2431_v34, %v2227_v37 }
 0x140   :  { %v1127_v20 = vadd.f32 %v1126_v35, %v1078_v62  ;;  %v1556_v53 = vmax.f32 %v1174_v42, 0.0  ;;  %v2219_v35 = vld [vmem:[#allocation5 + $0x2b8] sm:$0xf0] }
 0x141   :  { %1461 = vmatpush.bf16.msrb.mxu0 %v2230_v48  ;;  %v2211_v48 = vld [vmem:[#allocation5 + $0x2a8] sm:$0xf0] }
 0x145   :  { %v1175_v0 = vpop.f32.mrf.mxu2  ;;  %v1080_v49 = vpop.f32.mrf.mxu0 }
 0x146   :  { %v1176_v28 = vadd.f32 %v1175_v0, %v1127_v20  ;;  %v1081_v50 = vadd.f32 %v1080_v49, %v2782_v5  ;;  %v1129_v47 = vpop.f32.mrf.mxu1 }
 0x148   :  { %v1558_v52 = vmax.f32 %v1176_v28, 0.0  ;;  %v1130_v36 = vadd.f32 %v1129_v47, %v1081_v50  ;;  %1275 = vmatmul.bf16.gmra.mxu0 %v2668_v7 }
 0x149   :  { %1324 = vmatmul.bf16.gmra.mxu1 %v2670_v8 }
 0x14a   :  { %v2896_v19 = vpack.c.bf16 %v1558_v52, %v1556_v53  ;;  %1373 = vmatmul.bf16.gmra.mxu2 %v2672_v9 }
 0x14b   :  { %1422 = vmatmul.bf16.gmra.mxu3 %v2767_v14  ;;  %v2429_v14 = vld [vmem:[#allocation5 + $0x2b4] sm:$0xf] }
 0x14c   :  { %v2222_v20 = vor.u32 %v2429_v14, %v2219_v35  ;;  %v2203_v14 = vld [vmem:[#allocation5 + $0x298] sm:$0xf0] }
 0x14d   :  { %v1178_v59 = vpop.f32.mrf.mxu2  ;;  %v1082_v41 = vpop.f32.mrf.mxu0 }
 0x14e   :  { %v1179_v5 = vadd.f32 %v1178_v59, %v1130_v36  ;;  %v1083_v33 = vadd.f32 %v1082_v41, %v2791_v51  ;;  %v1131_v15 = vpop.f32.mrf.mxu1  ;;  %1462 = vmatpush.bf16.msrb.mxu0 %v2222_v20 }
 0x150   :  { %v1132_v22 = vadd.f32 %v1131_v15, %v1083_v33  ;;  %v1560_v9 = vmax.f32 %v1179_v5, 0.0 }
 0x155   :  { %v1180_v7 = vpop.f32.mrf.mxu2  ;;  %v1085_v10 = vpop.f32.mrf.mxu0 }
 0x156   :  { %v1181_v4 = vadd.f32 %v1180_v7, %v1132_v22  ;;  %v1086_v8 = vadd.f32 %v1085_v10, %v2799_v16  ;;  %v1134_v42 = vpop.f32.mrf.mxu1 }
 0x158   :  { %v1562_v45 = vmax.f32 %v1181_v4, 0.0  ;;  %v1135_v62 = vadd.f32 %v1134_v42, %v1086_v8  ;;  %1280 = vmatmul.bf16.gmra.mxu0 %v2680_v25  ;;  %v2910_v25 = vpop.f32.mrf.mxu3 }
 0x159   :  { %1329 = vmatmul.bf16.gmra.mxu1 %v2682_v26 }
 0x15a   :  { %1378 = vmatmul.bf16.gmra.mxu2 %v2684_v27  ;;  %v2906_v51 = vpack.c.bf16 %v1562_v45, %v1560_v9 }
 0x15b   :  { %1427 = vmatmul.bf16.gmra.mxu3 %v2784_v18 }
 0x15d   :  { %v1183_v0 = vpop.f32.mrf.mxu2  ;;  %v1087_v28 = vpop.f32.mrf.mxu0 }
 0x15e   :  { %v1184_v16 = vadd.f32 %v1183_v0, %v1135_v62  ;;  %v1088_v49 = vadd.f32 %v1087_v28, %v2808_v11  ;;  %v1136_v50 = vpop.f32.mrf.mxu1  ;;  %v2427_v11 = vld [vmem:[#allocation5 + $0x2a4] sm:$0xf]  ;;  %v2448_v62 = vld [vmem:[#allocation8 + $0x38] sm:$0xff] }
 0x15f   :  { %v2214_v5 = vor.u32 %v2427_v11, %v2211_v48  ;;  %1736 = vmatpush.bf16.msrb.mxu2 %v2448_v62  ;;  %v2447_v0 = vld [vmem:[#allocation8 + $0x30] sm:$0xff]  ;;  %v2195_v11 = vld [vmem:[#allocation5 + $0x288] sm:$0xf0]  ;;  %v3144_v62 = vld [vmem:[#allocation16_spill] sm:$0xff] }
 0x160   :  { %v1137_v47 = vadd.f32 %v1136_v50, %v1088_v49  ;;  %v1564_v34 = vmax.f32 %v1184_v16, 0.0  ;;  %v2919_v15 = vpop.f32.mrf.mxu3  ;;  %v2446_v50 = vld [vmem:[#allocation8 + $0x28] sm:$0xff] }
 0x161   :  { %1463 = vmatpush.bf16.msrb.mxu0 %v2214_v5 }
 0x163   :  { %1737 = vmatpush.bf16.msrb.mxu2 %v2447_v0 }
 0x165   :  { %v1185_v26 = vpop.f32.mrf.mxu2  ;;  %v1090_v27 = vpop.f32.mrf.mxu0 }
 0x166   :  { %v1186_v53 = vadd.f32 %v1185_v26, %v1137_v47  ;;  %v1091_v52 = vadd.f32 %v1090_v27, %v2816_v61  ;;  %v1139_v36 = vpop.f32.mrf.mxu1  ;;  %v2445_v26 = vld [vmem:[#allocation8 + $0x20] sm:$0xff] }
 0x167   :  { %1738 = vmatpush.bf16.msrb.mxu2 %v2446_v50 }
 0x168   :  { %v1566_v37 = vmax.f32 %v1186_v53, 0.0  ;;  %v1140_v18 = vadd.f32 %v1139_v36, %v1091_v52  ;;  %1285 = vmatmul.bf16.gmra.mxu0 %v2692_v43 }
 0x169   :  { %1334 = vmatmul.bf16.gmra.mxu1 %v2694_v44 }
 0x16a   :  { %1383 = vmatmul.bf16.gmra.mxu2 %v2696_v46  ;;  %v2916_v59 = vpack.c.bf16 %v1566_v37, %v1564_v34 }
 0x16b   :  { %1432 = vmatmul.bf16.gmra.mxu3 %v2801_v55  ;;  %v2923_v55 = vpop.f32.mrf.mxu3  ;;  %1739 = vmatpush.bf16.msrb.mxu2 %v2445_v26 }
 0x16d   :  { %v1188_v41 = vpop.f32.mrf.mxu2  ;;  %v1092_v33 = vpop.f32.mrf.mxu0 }
 0x16e   :  { %v1189_v61 = vadd.f32 %v1188_v41, %v1140_v18  ;;  %v1093_v22 = vadd.f32 %v1092_v33, %v2825_v54  ;;  %v1141_v43 = vpop.f32.mrf.mxu1  ;;  %v2425_v54 = vld [vmem:[#allocation5 + $0x294] sm:$0xf]  ;;  %v2423_v18 = vld [vmem:[#allocation5 + $0x284] sm:$0xf] }
 0x16f   :  { %v2198_v5 = vor.u32 %v2423_v18, %v2195_v11 }
 0x170   :  { %v1142_v7 = vadd.f32 %v1141_v43, %v1093_v22  ;;  %v1568_v42 = vmax.f32 %v1189_v61, 0.0  ;;  %v2443_v61 = vld [vmem:[#allocation8 + $0x10] sm:$0xff]  ;;  %v2442_v43 = vld [vmem:[#allocation8 + $0x8] sm:$0xff] }
 0x175   :  { %v1190_v44 = vpop.f32.mrf.mxu2  ;;  %v1095_v46 = vpop.f32.mrf.mxu0 }
 0x176   :  { %v1191_v4 = vadd.f32 %v1190_v44, %v1142_v7  ;;  %v1096_v10 = vadd.f32 %v1095_v46, %v2833_v30  ;;  %v1144_v8 = vpop.f32.mrf.mxu1  ;;  %v2206_v30 = vor.u32 %v2425_v54, %v2203_v14  ;;  %v2441_v44 = vld [vmem:[#allocation8] sm:$0xff] }
 0x178   :  { %v1570_v9 = vmax.f32 %v1191_v4, 0.0  ;;  %v1145_v45 = vadd.f32 %v1144_v8, %v1096_v10  ;;  %1290 = vmatmul.bf16.gmra.mxu0 %v2704_v1 }
 0x179   :  { %1339 = vmatmul.bf16.gmra.mxu1 %v2706_v2  ;;  %1464 = vmatpush.bf16.msrb.mxu0 %v2206_v30 }
 0x17a   :  { %1388 = vmatmul.bf16.gmra.mxu2 %v2708_v3  ;;  %v2928_v35 = vpack.c.bf16 %v1570_v9, %v1568_v42  ;;  %v2932_v3 = vpop.f32.mrf.mxu3 }
 0x17b   :  { %1437 = vmatmul.bf16.gmra.mxu3 %v2818_v32 }
 0x17d   :  { %v1193_v20 = vpop.f32.mrf.mxu2  ;;  %v1097_v28 = vpop.f32.mrf.mxu0  ;;  %1465 = vmatpush.bf16.msrb.mxu0 %v2198_v5 }
 0x17e   :  { %v1194_v16 = vadd.f32 %v1193_v20, %v1145_v45  ;;  %v1098_v1 = vadd.f32 %v1097_v28, %v2842_v13  ;;  %v1146_v49 = vpop.f32.mrf.mxu1  ;;  %v2444_v13 = vld [vmem:[#allocation8 + $0x18] sm:$0xff] }
 0x17f   :  { %1740 = vmatpush.bf16.msrb.mxu2 %v2444_v13  ;;  %v2469_v13 = vld [vmem:[#allocation7] sm:$0x3] }
 0x180   :  { %v1147_v2 = vadd.f32 %v1146_v49, %v1098_v1  ;;  %v1572_v36 = vmax.f32 %v1194_v16, 0.0  ;;  %v2965_v18 = vperm.slane %v2469_v13, 1 }
 0x183   :  { %1741 = vmatpush.bf16.msrb.mxu2 %v2443_v61  ;;  %v1223_v61 = vadd.f32 %v2910_v25, %v2965_v18  ;;  %v1225_v25 = vadd.f32 %v2919_v15, %v2965_v18  ;;  %v2454_v15 = vld [vmem:[#allocation8 + $0x68] sm:$0xff] }
 0x185   :  { %v1195_v47 = vpop.f32.mrf.mxu2  ;;  %v1100_v32 = vpop.f32.mrf.mxu0 }
 0x186   :  { %v1196_v53 = vadd.f32 %v1195_v47, %v1147_v2  ;;  %v1101_v27 = vadd.f32 %v1100_v32, %v2850_v56  ;;  %v1149_v52 = vpop.f32.mrf.mxu1  ;;  %v2941_v56 = vpop.f32.mrf.mxu3  ;;  %v3145_v32 = vld [vmem:[#allocation17_spill] sm:$0xff] }
 0x187   :  { %1742 = vmatpush.bf16.msrb.mxu2 %v2442_v43 }
 0x188   :  { %v1574_v34 = vmax.f32 %v1196_v53, 0.0  ;;  %v1150_v37 = vadd.f32 %v1149_v52, %v1101_v27  ;;  %1295 = vmatmul.bf16.gmra.mxu0 %v2716_v38  ;;  %v3146_v27 = vld [vmem:[#allocation18_spill] sm:$0xff]  ;;  %v3147_v52 = vld [vmem:[#allocation19_spill] sm:$0xff] }
 0x189   :  { %1344 = vmatmul.bf16.gmra.mxu1 %v2718_v39 }
 0x18a   :  { %1393 = vmatmul.bf16.gmra.mxu2 %v2720_v40  ;;  %v2938_v48 = vpack.c.bf16 %v1574_v34, %v1572_v36 }
 0x18b   :  { %1442 = vmatmul.bf16.gmra.mxu3 %v2835_v31  ;;  %1743 = vmatpush.bf16.msrb.mxu2 %v2441_v44  ;;  %v3148_v44 = vld [vmem:[#allocation20_spill] sm:$0xff] }
 0x18d   :  { %v1198_v41 = vpop.f32.mrf.mxu2  ;;  %v1102_v38 = vpop.f32.mrf.mxu0 }
 0x18e   :  { %v1199_v33 = vadd.f32 %v1198_v41, %v1150_v37  ;;  %v1103_v22 = vadd.f32 %v1102_v38, %v2859_v23  ;;  %v1151_v39 = vpop.f32.mrf.mxu1  ;;  %v2944_v46 = vpop.f32.mrf.mxu3  ;;  %v3143_v23 = vld [vmem:[#allocation15_spill] sm:$0xff] }
 0x190   :  { %v1152_v40 = vadd.f32 %v1151_v39, %v1103_v22  ;;  %v1576_v42 = vmax.f32 %v1199_v33, 0.0 }
 0x195   :  { %v1200_v7 = vpop.f32.mrf.mxu2  ;;  %v1105_v31 = vpop.f32.mrf.mxu0 }
 0x196   :  { %v1201_v4 = vadd.f32 %v1200_v7, %v1152_v40  ;;  %v1106_v10 = vadd.f32 %v1105_v31, %v2867_v24  ;;  %v1154_v8 = vpop.f32.mrf.mxu1  ;;  %v2954_v16 = vpop.f32.mrf.mxu3  ;;  %v3149_v31 = vld [vmem:[#allocation21_spill] sm:$0xff] }
 0x198   :  { %v1578_v9 = vmax.f32 %v1201_v4, 0.0  ;;  %v1155_v45 = vadd.f32 %v1154_v8, %v1106_v10  ;;  %1300 = vmatmul.bf16.gmra.mxu0 %v2728_v21  ;;  %v2455_v4 = vld [vmem:[#allocation8 + $0x70] sm:$0xff] }
 0x199   :  { %1349 = vmatmul.bf16.gmra.mxu1 %v3143_v23 }
 0x19a   :  { %1398 = vmatmul.bf16.gmra.mxu2 %v3144_v62  ;;  %v2950_v54 = vpack.c.bf16 %v1578_v9, %v1576_v42  ;;  %v1228_v62 = vadd.f32 %v2923_v55, %v2965_v18  ;;  %v1230_v55 = vadd.f32 %v2932_v3, %v2965_v18  ;;  %v3152_v3 = vld [vmem:[#allocation24_spill] sm:$0xff] }
 0x19b   :  { %1447 = vmatmul.bf16.gmra.mxu3 %v2852_v63  ;;  %v2456_v63 = vld [vmem:[#allocation8 + $0x78] sm:$0xff] }
 0x19c   :  { %1785 = vmatpush.bf16.msrb.mxu3 %v2456_v63  ;;  %v1233_v63 = vadd.f32 %v2941_v56, %v2965_v18  ;;  %v1235_v56 = vadd.f32 %v2944_v46, %v2965_v18  ;;  %v2452_v46 = vld [vmem:[#allocation8 + $0x58] sm:$0xff] }
 0x19d   :  { %v1203_v14 = vpop.f32.mrf.mxu2  ;;  %v1107_v20 = vpop.f32.mrf.mxu0 }
 0x19e   :  { %v1204_v30 = vadd.f32 %v1203_v14, %v1155_v45  ;;  %v1108_v24 = vadd.f32 %v1107_v20, %v2876_v29  ;;  %v1156_v0 = vpop.f32.mrf.mxu1  ;;  %v2962_v36 = vpop.f32.mrf.mxu3 }
 0x1a0   :  { %v1157_v28 = vadd.f32 %v1156_v0, %v1108_v24  ;;  %v1580_v47 = vmax.f32 %v1204_v30, 0.0  ;;  %1786 = vmatpush.bf16.msrb.mxu3 %v2455_v4 }
 0x1a4   :  { %1787 = vmatpush.bf16.msrb.mxu3 %v2454_v15 }
 0x1a5   :  { %v1205_v1 = vpop.f32.mrf.mxu2  ;;  %v1110_v21 = vpop.f32.mrf.mxu0 }
 0x1a6   :  { %v1206_v49 = vadd.f32 %v1205_v1, %v1157_v28  ;;  %v1111_v2 = vadd.f32 %v1110_v21, %v2884_v17  ;;  %v1159_v50 = vpop.f32.mrf.mxu1  ;;  %v1242_v14 = vpop.f32.mrf.mxu3  ;;  %v3150_v1 = vld [vmem:[#allocation22_spill] sm:$0xff] }
 0x1a8   :  { %v1582_v26 = vmax.f32 %v1206_v49, 0.0  ;;  %v1160_v53 = vadd.f32 %v1159_v50, %v1111_v2  ;;  %1305 = vmatmul.bf16.gmra.mxu0 %v3145_v32  ;;  %v3151_v49 = vld [vmem:[#allocation23_spill] sm:$0xff] }
 0x1a9   :  { %1354 = vmatmul.bf16.gmra.mxu1 %v3146_v27 }
 0x1aa   :  { %1403 = vmatmul.bf16.gmra.mxu2 %v3147_v52  ;;  %v2960_v29 = vpack.c.bf16 %v1582_v26, %v1580_v47 }
 0x1ab   :  { %1452 = vmatmul.bf16.gmra.mxu3 %v2869_v60 }
 0x1ad   :  { %v1208_v34 = vpop.f32.mrf.mxu2  ;;  %v1112_v37 = vpop.f32.mrf.mxu0 }
 0x1ae   :  { %v1209_v17 = vadd.f32 %v1208_v34, %v1160_v53  ;;  %v1113_v11 = vadd.f32 %v1112_v37, %v2887_v57  ;;  %v1161_v5 = vpop.f32.mrf.mxu1  ;;  %v1244_v2 = vpop.f32.mrf.mxu3 }
 0x1b0   :  { %v1162_v41 = vadd.f32 %v1161_v5, %v1113_v11  ;;  %v1584_v60 = vmax.f32 %v1209_v17, 0.0  ;;  %v2453_v11 = vld [vmem:[#allocation8 + $0x60] sm:$0xff]  ;;  %v3153_v5 = vld [vmem:[#allocation25_spill] sm:$0xff] }
 0x1b1   :  { %1788 = vmatpush.bf16.msrb.mxu3 %v2453_v11  ;;  %v3158_v11 = vld [vmem:[#allocation30_spill] sm:$0xff] }
 0x1b5   :  { %v1210_v33 = vpop.f32.mrf.mxu2  ;;  %v1271_v22 = vpop.f32.mrf.mxu0  ;;  %1789 = vmatpush.bf16.msrb.mxu3 %v2452_v46 }
 0x1b6   :  { %v1211_v38 = vadd.f32 %v1210_v33, %v1162_v41  ;;  %v1272_v39 = vadd.f32 %v1271_v22, %v1223_v61  ;;  %v1320_v40 = vpop.f32.mrf.mxu1  ;;  %v1247_v37 = vpop.f32.mrf.mxu3 }
 0x1b8   :  { %v1586_v43 = vmax.f32 %v1211_v38, 0.0  ;;  %v1321_v7 = vadd.f32 %v1320_v40, %v1272_v39  ;;  %1466 = vmatmul.bf16.vlgmr.msrb.gmra.mxu0 %v3148_v44 }
 0x1b9   :  { %2271 = vmatmul.msk.bf16.vlgmr.msrb.gmra.mxu1 %vm845_vm0, %v3149_v31 }
 0x1ba   :  { %1744 = vmatmul.bf16.vlgmr.msrb.gmra.mxu2 %v2896_v19  ;;  %v2974_v57 = vpack.c.bf16 %v1586_v43, %v1584_v60  ;;  %v1238_v60 = vadd.f32 %v2954_v16, %v2965_v18  ;;  %v1240_v16 = vadd.f32 %v2962_v36, %v2965_v18  ;;  %v2451_v36 = vld [vmem:[#allocation8 + $0x50] sm:$0xff] }
 0x1bb   :  { %1790 = vmatpush.bf16.msrb.mxu3 %v2451_v36 }
 0x1bd   :  { %v1369_v10 = vpop.f32.mrf.mxu2  ;;  %v1273_v42 = vpop.f32.mrf.mxu0 }
 0x1be   :  { %v2978_v8 = vadd.f32 %v1369_v10, %v1321_v7  ;;  %v1274_v9 = vadd.f32 %v1273_v42, %v1225_v25  ;;  %v1322_v45 = vpop.f32.mrf.mxu1  ;;  %v1249_v40 = vpop.f32.mrf.mxu3  ;;  %v3154_v25 = vld [vmem:[#allocation26_spill] sm:$0xff]  ;;  %v3155_v10 = vld [vmem:[#allocation27_spill] sm:$0xff] }
 0x1c0   :  { %v1323_v23 = vadd.f32 %v1322_v45, %v1274_v9 }
 0x1c5   :  { %v1371_v30 = vpop.f32.mrf.mxu2  ;;  %v1276_v19 = vpop.f32.mrf.mxu0 }
 0x1c6   :  { %v2982_v20 = vadd.f32 %v1371_v30, %v1323_v23  ;;  %v1277_v24 = vadd.f32 %v1276_v19, %v1228_v62  ;;  %v1325_v0 = vpop.f32.mrf.mxu1  ;;  %v1252_v42 = vpop.f32.mrf.mxu3 }
 0x1c8   :  { %v1326_v28 = vadd.f32 %v1325_v0, %v1277_v24  ;;  %1471 = vmatmul.bf16.gmra.mxu0 %v3150_v1  ;;  %v1243_v24 = vadd.f32 %v1242_v14, %v2965_v18  ;;  %v1245_v14 = vadd.f32 %v1244_v2, %v2965_v18  ;;  %v1250_v2 = vadd.f32 %v1249_v40, %v2965_v18 }
 0x1c9   :  { %2272 = vmatmul.msk.bf16.gmra.mxu1 %vm845_vm0, %v3151_v49 }
 0x1ca   :  { %1749 = vmatmul.bf16.gmra.mxu2 %v2906_v51 }
 0x1cd   :  { %v1374_v21 = vpop.f32.mrf.mxu2  ;;  %v1278_v47 = vpop.f32.mrf.mxu0 }
 0x1ce   :  { %v2990_v50 = vadd.f32 %v1374_v21, %v1326_v28  ;;  %v1279_v26 = vadd.f32 %v1278_v47, %v1230_v55  ;;  %v1327_v53 = vpop.f32.mrf.mxu1  ;;  %v1254_v28 = vpop.f32.mrf.mxu3  ;;  %v3156_v21 = vld [vmem:[#allocation28_spill] sm:$0xff]  ;;  %v3157_v47 = vld [vmem:[#allocation29_spill] sm:$0xff] }
 0x1cf   :  { %v1255_v40 = vadd.f32 %v1254_v28, %v2965_v18 }
 0x1d0   :  { %v1328_v32 = vadd.f32 %v1327_v53, %v1279_v26 }
 0x1d5   :  { %v1376_v27 = vpop.f32.mrf.mxu2  ;;  %v1281_v34 = vpop.f32.mrf.mxu0 }
 0x1d6   :  { %v2994_v52 = vadd.f32 %v1376_v27, %v1328_v32  ;;  %v1282_v51 = vadd.f32 %v1281_v34, %v1233_v63  ;;  %v1330_v17 = vpop.f32.mrf.mxu1  ;;  %v1257_v63 = vpop.f32.mrf.mxu3  ;;  %v1248_v34 = vadd.f32 %v1247_v37, %v2965_v18 }
 0x1d8   :  { %v1331_v13 = vadd.f32 %v1330_v17, %v1282_v51  ;;  %1476 = vmatmul.bf16.gmra.mxu0 %v3152_v3 }
 0x1d9   :  { %2273 = vmatmul.msk.bf16.gmra.mxu1 %vm845_vm0, %v3153_v5  ;;  %v2450_v5 = vld [vmem:[#allocation8 + $0x48] sm:$0xff] }
 0x1da   :  { %1754 = vmatmul.bf16.gmra.mxu2 %v2916_v59  ;;  %1791 = vmatpush.bf16.msrb.mxu3 %v2450_v5 }
 0x1dd   :  { %v1379_v41 = vpop.f32.mrf.mxu2  ;;  %v1283_v33 = vpop.f32.mrf.mxu0 }
 0x1de   :  { %v3002_v61 = vadd.f32 %v1379_v41, %v1331_v13  ;;  %v1284_v38 = vadd.f32 %v1283_v33, %v1235_v56  ;;  %v1332_v22 = vpop.f32.mrf.mxu1  ;;  %v3159_v56 = vld [vmem:[#allocation31_spill] sm:$0xff] }
 0x1e0   :  { %v1333_v39 = vadd.f32 %v1332_v22, %v1284_v38  ;;  %v1253_v22 = vadd.f32 %v1252_v42, %v2965_v18  ;;  %v1258_v42 = vadd.f32 %v1257_v63, %v2965_v18 }
 0x1e5   :  { %v1381_v43 = vpop.f32.mrf.mxu2  ;;  %v1286_v44 = vpop.f32.mrf.mxu0 }
 0x1e6   :  { %v3006_v7 = vadd.f32 %v1381_v43, %v1333_v39  ;;  %v1287_v59 = vadd.f32 %v1286_v44, %v1238_v60  ;;  %v1335_v4 = vpop.f32.mrf.mxu1 }
 0x1e8   :  { %v1336_v31 = vadd.f32 %v1335_v4, %v1287_v59  ;;  %1481 = vmatmul.bf16.gmra.mxu0 %v3154_v25 }
 0x1e9   :  { %2274 = vmatmul.msk.bf16.gmra.mxu1 %vm845_vm0, %v3155_v10 }
 0x1ea   :  { %1759 = vmatmul.bf16.gmra.mxu2 %v2928_v35 }
 0x1ed   :  { %v1384_v9 = vpop.f32.mrf.mxu2  ;;  %v1288_v23 = vpop.f32.mrf.mxu0 }
 0x1ee   :  { %v3014_v45 = vadd.f32 %v1384_v9, %v1336_v31  ;;  %v1289_v62 = vadd.f32 %v1288_v23, %v1240_v16  ;;  %v1337_v30 = vpop.f32.mrf.mxu1 }
 0x1f0   :  { %v1338_v19 = vadd.f32 %v1337_v30, %v1289_v62 }
 0x1f5   :  { %v1386_v0 = vpop.f32.mrf.mxu2  ;;  %v1291_v15 = vpop.f32.mrf.mxu0 }
 0x1f6   :  { %v3017_v1 = vadd.f32 %v1386_v0, %v1338_v19  ;;  %v1292_v35 = vadd.f32 %v1291_v15, %v1243_v24  ;;  %v1340_v49 = vpop.f32.mrf.mxu1 }
 0x1f8   :  { %v3019_v55 = vadd.f32 %v1340_v49, %v1292_v35  ;;  %1486 = vmatmul.bf16.gmra.mxu0 %v3156_v21 }
 0x1f9   :  { %2275 = vmatmul.msk.bf16.gmra.mxu1 %vm845_vm0, %v3157_v47 }
 0x1fa   :  { %1764 = vmatmul.bf16.gmra.mxu2 %v2938_v48  ;;  %v1259_v48 = vpop.f32.mrf.mxu3 }
 0x1fd   :  { %v1293_v26 = vpop.f32.mrf.mxu0 }
 0x1fe   :  { %v1294_v53 = vadd.f32 %v1293_v26, %v1245_v14  ;;  %v1342_v32 = vpop.f32.mrf.mxu1 }
 0x200   :  { %v3026_v27 = vadd.f32 %v1342_v32, %v1294_v53 }
 0x202   :  { %v1418_v39 = vpop.f32.mrf.mxu3 }
 0x203   :  { %v1419_v49 = vadd.f32 %v1418_v39, %v2978_v8 }
 0x205   :  { %v1296_v51 = vpop.f32.mrf.mxu0 }
 0x206   :  { %v1297_v17 = vadd.f32 %v1296_v51, %v1248_v34  ;;  %v1345_v13 = vpop.f32.mrf.mxu1 }
 0x208   :  { %v3029_v3 = vadd.f32 %v1345_v13, %v1297_v17  ;;  %1491 = vmatmul.bf16.gmra.mxu0 %v3158_v11 }
 0x209   :  { %2276 = vmatmul.msk.bf16.gmra.mxu1 %vm845_vm0, %v3159_v56 }
 0x20a   :  { %1769 = vmatmul.bf16.gmra.mxu2 %v2950_v54  ;;  %v2449_v54 = vld [vmem:[#allocation8 + $0x40] sm:$0xff]  ;;  %v1420_v4 = vpop.f32.mrf.mxu3 }
 0x20b   :  { %1792 = vmatpush.bf16.msrb.mxu3 %v2449_v54 }
 0x20d   :  { %v1298_v41 = vpop.f32.mrf.mxu0 }
 0x20e   :  { %v1299_v33 = vadd.f32 %v1298_v41, %v1250_v2  ;;  %v1347_v37 = vpop.f32.mrf.mxu1 }
 0x210   :  { %v3036_v38 = vadd.f32 %v1347_v37, %v1299_v33 }
 0x212   :  { %v1423_v23 = vpop.f32.mrf.mxu3 }
 0x213   :  { %v1424_v13 = vadd.f32 %v1423_v23, %v2990_v50 }
 0x215   :  { %v1301_v60 = vpop.f32.mrf.mxu0 }
 0x216   :  { %v1302_v43 = vadd.f32 %v1301_v60, %v1253_v22  ;;  %v1350_v44 = vpop.f32.mrf.mxu1 }
 0x218   :  { %v3039_v59 = vadd.f32 %v1350_v44, %v1302_v43  ;;  %1496 = vmatmul.bf16.gmra.mxu0 %v2854_v58  ;;  %v1389_v43 = vpop.f32.mrf.mxu2 }
 0x219   :  { %2277 = vmatmul.msk.bf16.gmra.mxu1 %vm845_vm0, %v2856_v12  ;;  %v3160_v12 = vld [vmem:[#allocation32_spill] sm:$0xff] }
 0x21a   :  { %1774 = vmatmul.bf16.gmra.mxu2 %v2960_v29  ;;  %v1260_v29 = vadd.f32 %v1259_v48, %v2965_v18  ;;  %v1425_v28 = vpop.f32.mrf.mxu3 }
 0x21b   :  { %v1426_v8 = vadd.f32 %v1425_v28, %v2994_v52 }
 0x21d   :  { %v1303_v31 = vpop.f32.mrf.mxu0 }
 0x21e   :  { %v1304_v25 = vadd.f32 %v1303_v31, %v1255_v40  ;;  %v1352_v46 = vpop.f32.mrf.mxu1 }
 0x220   :  { %v3046_v10 = vadd.f32 %v1352_v46, %v1304_v25 }
 0x222   :  { %v1428_v36 = vpop.f32.mrf.mxu3 }
 0x223   :  { %v1429_v44 = vadd.f32 %v1428_v36, %v3002_v61 }
 0x225   :  { %v1306_v16 = vpop.f32.mrf.mxu0 }
 0x226   :  { %v1307_v9 = vadd.f32 %v1306_v16, %v1258_v42  ;;  %v1355_v58 = vpop.f32.mrf.mxu1  ;;  %v1391_v42 = vpop.f32.mrf.mxu2 }
 0x228   :  { %v3049_v62 = vadd.f32 %v1355_v58, %v1307_v9  ;;  %1501 = vmatmul.bf16.gmra.mxu0 %v2871_v6  ;;  %v1421_v6 = vadd.f32 %v1420_v4, %v2982_v20 }
 0x229   :  { %2278 = vmatmul.msk.bf16.gmra.mxu1 %vm845_vm0, %v3160_v12 }
 0x22a   :  { %1779 = vmatmul.bf16.gmra.mxu2 %v2974_v57  ;;  %v1430_v34 = vpop.f32.mrf.mxu3 }
 0x22b   :  { %v1431_v40 = vadd.f32 %v1430_v34, %v3006_v7 }
 0x22d   :  { %v1308_v30 = vpop.f32.mrf.mxu0 }
 0x22e   :  { %v1309_v19 = vadd.f32 %v1308_v30, %v1260_v29  ;;  %v1357_v24 = vpop.f32.mrf.mxu1 }
 0x230   :  { %v3056_v0 = vadd.f32 %v1357_v24, %v1309_v19  ;;  %v1394_v19 = vpop.f32.mrf.mxu2 }
 0x232   :  { %v1433_v2 = vpop.f32.mrf.mxu3 }
 0x233   :  { %v1434_v30 = vadd.f32 %v1433_v2, %v3014_v45 }
 0x235   :  { %v1467_v15 = vpop.f32.mrf.mxu0 }
 0x236   :  { %v1516_v35 = vpop.f32.mrf.mxu1  ;;  %v1468_v21 = vadd.f32 %v1467_v15, %v1419_v49 }
 0x238   :  { %v1517_v14 = vadd.f32 %v1516_v35, %v1468_v21 }
 0x23a   :  { %v1557_v18 = vmax.f32 %v1517_v14, 0.0  ;;  %v1435_v54 = vpop.f32.mrf.mxu3 }
 0x23b   :  { %v1436_v24 = vadd.f32 %v1435_v54, %v3017_v1 }
 0x23d   :  { %v1469_v47 = vpop.f32.mrf.mxu0 }
 0x23e   :  { %v1470_v26 = vadd.f32 %v1469_v47, %v1421_v6  ;;  %v1518_v57 = vpop.f32.mrf.mxu1  ;;  %v1390_v47 = vadd.f32 %v1389_v43, %v3019_v55 }
 0x240   :  { %v1519_v53 = vadd.f32 %v1518_v57, %v1470_v26  ;;  %v1396_v26 = vpop.f32.mrf.mxu2 }
 0x242   :  { %v1559_v32 = vmax.f32 %v1519_v53, 0.0  ;;  %v1438_v58 = vpop.f32.mrf.mxu3 }
 0x244   :  { %v1589_v63 = vpack.c.bf16 %v1559_v32, %v1557_v18  ;;  %v1439_v18 = vadd.f32 %v1438_v58, %v1390_v47  ;;  %v1392_v32 = vadd.f32 %v1391_v42, %v3026_v27  ;;  %v1397_v27 = vadd.f32 %v1396_v26, %v3036_v38 }
 0x245   :  { %v1472_v51 = vpop.f32.mrf.mxu0 }
 0x246   :  { %v1521_v17 = vpop.f32.mrf.mxu1  ;;  %1793 = vmatmul.bf16.vlgmr.msrb.gmra.mxu3 %v1589_v63  ;;  %v1473_v11 = vadd.f32 %v1472_v51, %v1424_v13 }
 0x248   :  { %v1522_v48 = vadd.f32 %v1521_v17, %v1473_v11  ;;  %v1399_v11 = vpop.f32.mrf.mxu2 }
 0x24a   :  { %v1561_v33 = vmax.f32 %v1522_v48, 0.0  ;;  %v1440_v7 = vpop.f32.mrf.mxu3 }
 0x24b   :  { %v1441_v63 = vadd.f32 %v1440_v7, %v1392_v32 }
 0x24d   :  { %v1474_v5 = vpop.f32.mrf.mxu0 }
 0x24e   :  { %v1475_v20 = vadd.f32 %v1474_v5, %v1426_v8  ;;  %v1523_v56 = vpop.f32.mrf.mxu1 }
 0x250   :  { %v1524_v41 = vadd.f32 %v1523_v56, %v1475_v20  ;;  %v1395_v20 = vadd.f32 %v1394_v19, %v3029_v3  ;;  %v1400_v3 = vadd.f32 %v1399_v11, %v3039_v59 }
 0x252   :  { %v1563_v37 = vmax.f32 %v1524_v41, 0.0  ;;  %v1443_v45 = vpop.f32.mrf.mxu3 }
 0x254   :  { %v1591_v22 = vpack.c.bf16 %v1563_v37, %v1561_v33  ;;  %v1444_v33 = vadd.f32 %v1443_v45, %v1395_v20  ;;  %v1401_v37 = vpop.f32.mrf.mxu2 }
 0x255   :  { %v1477_v39 = vpop.f32.mrf.mxu0 }
 0x256   :  { %v1526_v60 = vpop.f32.mrf.mxu1  ;;  %1798 = vmatmul.bf16.gmra.mxu3 %v1591_v22  ;;  %v1478_v50 = vadd.f32 %v1477_v39, %v1429_v44 }
 0x258   :  { %v1527_v4 = vadd.f32 %v1526_v60, %v1478_v50 }
 0x25a   :  { %v1565_v16 = vmax.f32 %v1527_v4, 0.0  ;;  %v1445_v5 = vpop.f32.mrf.mxu3 }
 0x25b   :  { %v1446_v60 = vadd.f32 %v1445_v5, %v1397_v27 }
 0x25d   :  { %v1479_v52 = vpop.f32.mrf.mxu0 }
 0x25e   :  { %v1480_v31 = vadd.f32 %v1479_v52, %v1431_v40  ;;  %v1528_v25 = vpop.f32.mrf.mxu1 }
 0x260   :  { %v1529_v46 = vadd.f32 %v1528_v25, %v1480_v31  ;;  %v1404_v31 = vpop.f32.mrf.mxu2 }
 0x261   :  { %v1405_v59 = vadd.f32 %v1404_v31, %v3049_v62 }
 0x262   :  { %v1567_v9 = vmax.f32 %v1529_v46, 0.0  ;;  %v1448_v39 = vpop.f32.mrf.mxu3 }
 0x263   :  { %v1449_v38 = vadd.f32 %v1448_v39, %v1400_v3 }
 0x264   :  { %v1593_v23 = vpack.c.bf16 %v1567_v9, %v1565_v16  ;;  %v1402_v9 = vadd.f32 %v1401_v37, %v3046_v10 }
 0x265   :  { %v1482_v12 = vpop.f32.mrf.mxu0 }
 0x266   :  { %v1531_v29 = vpop.f32.mrf.mxu1  ;;  %1803 = vmatmul.bf16.gmra.mxu3 %v1593_v23  ;;  %v1483_v61 = vadd.f32 %v1482_v12, %v1434_v30 }
 0x268   :  { %v1532_v15 = vadd.f32 %v1531_v29, %v1483_v61  ;;  %v1406_v12 = vpop.f32.mrf.mxu2 }
 0x269   :  { %v1407_v10 = vadd.f32 %v1406_v12, %v3056_v0 }
 0x26a   :  { %v1569_v36 = vmax.f32 %v1532_v15, 0.0  ;;  %v1450_v46 = vpop.f32.mrf.mxu3 }
 0x26b   :  { %v1451_v23 = vadd.f32 %v1450_v46, %v1402_v9 }
 0x26d   :  { %v1484_v28 = vpop.f32.mrf.mxu0 }
 0x26e   :  { %v1485_v35 = vadd.f32 %v1484_v28, %v1436_v24  ;;  %v1533_v49 = vpop.f32.mrf.mxu1 }
 0x270   :  { %v1534_v21 = vadd.f32 %v1533_v49, %v1485_v35 }
 0x272   :  { %v1571_v6 = vmax.f32 %v1534_v21, 0.0  ;;  %v1453_v24 = vpop.f32.mrf.mxu3 }
 0x274   :  { %v1595_v14 = vpack.c.bf16 %v1571_v6, %v1569_v36  ;;  %v1745_v36 = vpop.f32.mrf.mxu2  ;;  %v1454_v6 = vadd.f32 %v1453_v24, %v1405_v59 }
 0x275   :  { %v1487_v57 = vpop.f32.mrf.mxu0 }
 0x276   :  { %v1536_v53 = vpop.f32.mrf.mxu1  ;;  %1808 = vmatmul.bf16.gmra.mxu3 %v1595_v14  ;;  %v1488_v1 = vadd.f32 %v1487_v57, %v1439_v18 }
 0x278   :  { %v1537_v51 = vadd.f32 %v1536_v53, %v1488_v1 }
 0x27a   :  { %v1573_v48 = vmax.f32 %v1537_v51, 0.0  ;;  %v1455_v47 = vpop.f32.mrf.mxu3 }
 0x27b   :  { %v1456_v26 = vadd.f32 %v1455_v47, %v1407_v10 }
 0x27c   :  { %v1747_v1 = vpop.f32.mrf.mxu2 }
 0x27d   :  { %v1489_v34 = vpop.f32.mrf.mxu0 }
 0x27e   :  { %v1490_v17 = vadd.f32 %v1489_v34, %v1441_v63  ;;  %v1538_v13 = vpop.f32.mrf.mxu1 }
 0x280   :  { %v1539_v8 = vadd.f32 %v1538_v13, %v1490_v17  ;;  %v3077_v17 = vld [vmem:[%s3105_s4] ss:$0 sm:$0xff] }
 0x281   :  { %v1746_v13 = vadd.f32 %v3077_v17, %v1745_v36 }
 0x282   :  { %v1575_v55 = vmax.f32 %v1539_v8, 0.0 }
 0x284   :  { %v1597_v56 = vpack.c.bf16 %v1575_v55, %v1573_v48  ;;  %v1750_v51 = vpop.f32.mrf.mxu2  ;;  %v1748_v48 = vadd.f32 %v3077_v17, %v1747_v1 }
 0x285   :  { %v1492_v2 = vpop.f32.mrf.mxu0 }
 0x286   :  { %v1541_v41 = vpop.f32.mrf.mxu1  ;;  %1813 = vmatmul.bf16.gmra.mxu3 %v1597_v56  ;;  %v1493_v22 = vadd.f32 %v1492_v2, %v1444_v33  ;;  %v1751_v56 = vadd.f32 %v3077_v17, %v1750_v51 }
 0x288   :  { %v1542_v44 = vadd.f32 %v1541_v41, %v1493_v22 }
 0x28a   :  { %v1577_v52 = vmax.f32 %v1542_v44, 0.0 }
 0x28c   :  { %v1752_v0 = vpop.f32.mrf.mxu2 }
 0x28d   :  { %v1494_v43 = vpop.f32.mrf.mxu0  ;;  %v1753_v27 = vadd.f32 %v3077_v17, %v1752_v0 }
 0x28e   :  { %v1495_v54 = vadd.f32 %v1494_v43, %v1446_v60  ;;  %v1543_v50 = vpop.f32.mrf.mxu1 }
 0x290   :  { %v1544_v40 = vadd.f32 %v1543_v50, %v1495_v54 }
 0x292   :  { %v1579_v4 = vmax.f32 %v1544_v40, 0.0 }
 0x294   :  { %v1599_v25 = vpack.c.bf16 %v1579_v4, %v1577_v52  ;;  %v1755_v5 = vpop.f32.mrf.mxu2 }
 0x295   :  { %v1497_v42 = vpop.f32.mrf.mxu0  ;;  %v1756_v60 = vadd.f32 %v3077_v17, %v1755_v5 }
 0x296   :  { %v1546_v16 = vpop.f32.mrf.mxu1  ;;  %1818 = vmatmul.bf16.gmra.mxu3 %v1599_v25  ;;  %v1498_v58 = vadd.f32 %v1497_v42, %v1449_v38 }
 0x298   :  { %v1547_v30 = vadd.f32 %v1546_v16, %v1498_v58 }
 0x29a   :  { %v1581_v28 = vmax.f32 %v1547_v30, 0.0 }
 0x29c   :  { %v1757_v2 = vpop.f32.mrf.mxu2 }
 0x29d   :  { %v1499_v29 = vpop.f32.mrf.mxu0  ;;  %v1758_v50 = vadd.f32 %v3077_v17, %v1757_v2 }
 0x29e   :  { %v1500_v61 = vadd.f32 %v1499_v29, %v1451_v23  ;;  %v1548_v19 = vpop.f32.mrf.mxu1 }
 0x2a0   :  { %v1549_v7 = vadd.f32 %v1548_v19, %v1500_v61 }
 0x2a2   :  { %v1583_v15 = vmax.f32 %v1549_v7, 0.0 }
 0x2a4   :  { %v1601_v35 = vpack.c.bf16 %v1583_v15, %v1581_v28  ;;  %v1760_v39 = vpop.f32.mrf.mxu2 }
 0x2a5   :  { %v1502_v49 = vpop.f32.mrf.mxu0  ;;  %v1761_v31 = vadd.f32 %v3077_v17, %v1760_v39 }
 0x2a6   :  { %v1551_v21 = vpop.f32.mrf.mxu1  ;;  %1823 = vmatmul.bf16.gmra.mxu3 %v1601_v35  ;;  %v1503_v14 = vadd.f32 %v1502_v49, %v1454_v6 }
 0x2a8   :  { %v1552_v53 = vadd.f32 %v1551_v21, %v1503_v14 }
 0x2aa   :  { %v1585_v63 = vmax.f32 %v1552_v53, 0.0 }
 0x2ac   :  { %v1762_v54 = vpop.f32.mrf.mxu2 }
 0x2ad   :  { %v1504_v57 = vpop.f32.mrf.mxu0  ;;  %v1763_v46 = vadd.f32 %v3077_v17, %v1762_v54 }
 0x2ae   :  { %v1505_v45 = vadd.f32 %v1504_v57, %v1456_v26  ;;  %v1553_v18 = vpop.f32.mrf.mxu1 }
 0x2b0   :  { %v1554_v32 = vadd.f32 %v1553_v18, %v1505_v45 }
 0x2b2   :  { %v1587_v34 = vmax.f32 %v1554_v32, 0.0 }
 0x2b4   :  { %v1603_v62 = vpack.c.bf16 %v1587_v34, %v1585_v63  ;;  %v1765_v4 = vpop.f32.mrf.mxu2 }
 0x2b5   :  { %v1766_v9 = vadd.f32 %v3077_v17, %v1765_v4 }
 0x2b6   :  { %1828 = vmatmul.bf16.gmra.mxu3 %v1603_v62 }
 0x2bc   :  { %v1767_v42 = vpop.f32.mrf.mxu2 }
 0x2bd   :  { %v1768_v29 = vadd.f32 %v3077_v17, %v1767_v42 }
 0x2c4   :  { %v1770_v12 = vpop.f32.mrf.mxu2 }
 0x2c5   :  { %v1771_v24 = vadd.f32 %v3077_v17, %v1770_v12 }
 0x2c9   :  { %v1794_v11 = vpop.f32.mrf.mxu3 }
 0x2ca   :  { %v1795_v8 = vadd.f32 %v1794_v11, %v1746_v13 }
 0x2cc   :  { %1834 = vst [vmem:[#allocation10] sm:$0xff] %v1795_v8  ;;  %v1772_v19 = vpop.f32.mrf.mxu2 }
 0x2cd   :  { %v1773_v59 = vadd.f32 %v3077_v17, %v1772_v19 }
 0x2d1   :  { %v1796_v55 = vpop.f32.mrf.mxu3 }
 0x2d2   :  { %v1797_v20 = vadd.f32 %v1796_v55, %v1748_v48 }
 0x2d4   :  { %1835 = vst [vmem:[#allocation10 + $0x8] sm:$0xff] %v1797_v20  ;;  %v1775_v15 = vpop.f32.mrf.mxu2 }
 0x2d5   :  { %v1776_v21 = vadd.f32 %v3077_v17, %v1775_v15 }
 0x2d9   :  { %v1799_v41 = vpop.f32.mrf.mxu3 }
 0x2da   :  { %v1800_v33 = vadd.f32 %v1799_v41, %v1751_v56 }
 0x2dc   :  { %1836 = vst [vmem:[#allocation10 + $0x10] sm:$0xff] %v1800_v33  ;;  %v1777_v36 = vpop.f32.mrf.mxu2 }
 0x2dd   :  { %v1778_v47 = vadd.f32 %v3077_v17, %v1777_v36 }
 0x2e1   :  { %v1801_v37 = vpop.f32.mrf.mxu3 }
 0x2e2   :  { %v1802_v22 = vadd.f32 %v1801_v37, %v1753_v27 }
 0x2e4   :  { %1837 = vst [vmem:[#allocation10 + $0x18] sm:$0xff] %v1802_v22  ;;  %v1780_v57 = vpop.f32.mrf.mxu2 }
 0x2e5   :  { %v1781_v53 = vadd.f32 %v3077_v17, %v1780_v57 }
 0x2e9   :  { %v1804_v43 = vpop.f32.mrf.mxu3 }
 0x2ea   :  { %v1805_v44 = vadd.f32 %v1804_v43, %v1756_v60 }
 0x2ec   :  { %1838 = vst [vmem:[#allocation10 + $0x20] sm:$0xff] %v1805_v44  ;;  %v1782_v32 = vpop.f32.mrf.mxu2 }
 0x2ed   :  { %v1783_v1 = vadd.f32 %v3077_v17, %v1782_v32 }
 0x2f1   :  { %v1806_v40 = vpop.f32.mrf.mxu3 }
 0x2f2   :  { %v1807_v52 = vadd.f32 %v1806_v40, %v1758_v50 }
 0x2f4   :  { %1839 = vst [vmem:[#allocation10 + $0x28] sm:$0xff] %v1807_v52 }
 0x2f9   :  { %v1809_v3 = vpop.f32.mrf.mxu3 }
 0x2fa   :  { %v1810_v25 = vadd.f32 %v1809_v3, %v1761_v31 }
 0x2fc   :  { %1840 = vst [vmem:[#allocation10 + $0x30] sm:$0xff] %v1810_v25 }
 0x301   :  { %v1811_v16 = vpop.f32.mrf.mxu3 }
 0x302   :  { %v1812_v38 = vadd.f32 %v1811_v16, %v1763_v46 }
 0x304   :  { %1841 = vst [vmem:[#allocation10 + $0x38] sm:$0xff] %v1812_v38 }
 0x309   :  { %v1814_v58 = vpop.f32.mrf.mxu3 }
 0x30a   :  { %v1815_v23 = vadd.f32 %v1814_v58, %v1766_v9 }
 0x30c   :  { %1842 = vst [vmem:[#allocation10 + $0x40] sm:$0xff] %v1815_v23 }
 0x311   :  { %v1816_v30 = vpop.f32.mrf.mxu3 }
 0x312   :  { %v1817_v61 = vadd.f32 %v1816_v30, %v1768_v29 }
 0x314   :  { %1843 = vst [vmem:[#allocation10 + $0x48] sm:$0xff] %v1817_v61 }
 0x319   :  { %v1819_v7 = vpop.f32.mrf.mxu3 }
 0x31a   :  { %v1820_v28 = vadd.f32 %v1819_v7, %v1771_v24 }
 0x31c   :  { %1844 = vst [vmem:[#allocation10 + $0x50] sm:$0xff] %v1820_v28 }
 0x321   :  { %v1821_v35 = vpop.f32.mrf.mxu3 }
 0x322   :  { %v1822_v49 = vadd.f32 %v1821_v35, %v1773_v59 }
 0x324   :  { %1845 = vst [vmem:[#allocation10 + $0x58] sm:$0xff] %v1822_v49 }
 0x329   :  { %v1824_v6 = vpop.f32.mrf.mxu3 }
 0x32a   :  { %v1825_v10 = vadd.f32 %v1824_v6, %v1776_v21 }
 0x32c   :  { %1846 = vst [vmem:[#allocation10 + $0x60] sm:$0xff] %v1825_v10 }
 0x331   :  { %v1826_v14 = vpop.f32.mrf.mxu3 }
 0x332   :  { %v1827_v26 = vadd.f32 %v1826_v14, %v1778_v47 }
 0x334   :  { %1847 = vst [vmem:[#allocation10 + $0x68] sm:$0xff] %v1827_v26 }
 0x339   :  { %v1829_v45 = vpop.f32.mrf.mxu3 }
 0x33a   :  { %v1830_v18 = vadd.f32 %v1829_v45, %v1781_v53 }
 0x33c   :  { %1848 = vst [vmem:[#allocation10 + $0x70] sm:$0xff] %v1830_v18 }
 0x341   :  { %v1831_v63 = vpop.f32.mrf.mxu3 }
 0x342   :  { %v1832_v34 = vadd.f32 %v1831_v63, %v1783_v1 }
 0x344   :  { %1849 = vst [vmem:[#allocation10 + $0x78] sm:$0xff] %v1832_v34 }
 0x345   :  { %1853 = vsyncadd [#allocation4], 1920  ;;  %s1856_s18 = sshll.u32 %s3106_s5, 4  ;;  %s2608_s19 = smov [#allocation10]   ;;  %s1857_s18 = int_to_ptr.hbm [resolvable:$true] %s1856_s18 }
 0x346   :  { %s1854_s20 = sshll.u32 %s2608_s19, 4  ;;  %s1855_s20 = int_to_ptr.vmem [resolvable:$true] %s1854_s20 }
 0x347   :  { %1862 = dma.vmem_to_hbm [thread:$0]  %s1855_s20, 128, %s1857_s18, [#allocation4], %s2599_s26, %s2599_s26, %s2600_s27  }
 0x348   :  { %2596 = dma.done.wait [#allocation4], 2048  }
 0x349   :  { %2597 = vsyncadd [#allocation4], 4294965248 }
 0x34a   :  { %1867 = vsyncpa [#allocation3], 1 }
 0x34b   :  { %1868 = vsyncpa [#allocation6], 1 }
 0x34c   :  { %1869 = vsyncpa [#allocation9], 1 }
 0x34d   :  { %1870 = vsyncpa [#allocation4], 1 }

</bundles_post_ra>
